<compile_context>
chip_gen: v5e
topology: v5e:2x2
jax: 0.10.0
libtpu: 0.0.40
codegen_flags: <defaults>
</compile_context>

<pallas_src>
import jax
import jax.numpy as jnp
import numpy as np
from jax.experimental import pallas as pl
from jax.experimental.pallas import tpu as pltpu

EPS = 1e-6

# Column layout of the packed (2C, N_VEC) per-channel-vector operand.
(V_LN1W, V_LN1B, V_LN2W, V_LN2B, V_B1, V_B2, V_B3, V_B4, V_B5,
 V_BETA, V_GAMMA, V_W2) = range(12)          # V_W2 .. V_W2+8 = depthwise taps
N_VEC = V_W2 + 9


def make_nafblock_kernel(H, W, C, BB):
    HW = H * W
    PAD = W + 1                                 # flattened 3x3 offsets lie in [-(W+1), W+1]
    LPAD = ((PAD + 127) // 128) * 128           # round halo to a lane tile -> aligned interior store
    TAPS = [(k // 3 - 1, k % 3 - 1) for k in range(9)]

    def kernel(x_ref, vecs_ref, w1_ref, w3_ref, w4_ref, w5_ref,
               o_ref, pad_ref, gcat_ref):
        # ---- per-step constants shared by all BB images ----
        ww = jax.lax.broadcasted_iota(jnp.int32, (1, HW), 1) % W
        # hoisted boundary-mask broadcasts (JAX does not CSE broadcast_in_dim)
        mL = jnp.broadcast_to((ww >= 1).astype(jnp.float32), (2 * C, HW))       # valid when dx = -1
        mR = jnp.broadcast_to((ww <= W - 2).astype(jnp.float32), (2 * C, HW))   # valid when dx = +1
        mL1, mR1 = mL[0:C, :], mR[0:C, :]

        vecs = vecs_ref[...]
        vC = lambda j: vecs[0:C, j:j + 1]        # (C, 1)  per-channel vector
        v2C = lambda j: vecs[:, j:j + 1]         # (2C, 1)
        ln1w, ln1b = vC(V_LN1W), vC(V_LN1B)
        ln2w, ln2b = vC(V_LN2W), vC(V_LN2B)
        b1, b2, b4 = v2C(V_B1), v2C(V_B2), v2C(V_B4)
        b3, b5 = vC(V_B3), vC(V_B5)
        beta, gamma = vC(V_BETA), vC(V_GAMMA)
        w2c = [v2C(V_W2 + k) for k in range(9)]  # depthwise 3x3 per-tap columns
        w1, w3, w4, w5 = w1_ref[...], w3_ref[...], w4_ref[...], w5_ref[...]

        # Zero the lane halo once per grid step; interior stores never touch it.
        zhalo = jnp.zeros((2 * C, LPAD), jnp.float32)
        pad_ref[:, 0:LPAD] = zhalo
        pad_ref[:, LPAD + HW:LPAD + HW + LPAD] = zhalo

        def layer_norm(v, w, b):                 # per-pixel LN over channels (sublanes)
            mu = jnp.mean(v, axis=0, keepdims=True)
            var = jnp.mean(jnp.square(v - mu), axis=0, keepdims=True)
            return (v - mu) * jax.lax.rsqrt(var + EPS) * w + b

        for bb in range(BB):                     # small static unroll over images in this step
            x = x_ref[bb]                        # (C, HW)

            # ---- branch 1: LN -> conv1(1x1) -> conv2(3x3 dw) -> SimpleGate -> conv3(3x3 grouped)
            t1 = layer_norm(x, ln1w, ln1b)
            u = jnp.dot(w1, t1, preferred_element_type=jnp.float32) + b1     # (2C, HW)

            pad_ref[:, LPAD:LPAD + HW] = u
            d = u * w2c[4] + b2                  # center tap seeds the accumulator
            for k in range(9):
                if k == 4:
                    continue
                dy, dx = TAPS[k]
                s = LPAD + dy * W + dx
                t = pad_ref[:, s:s + HW]
                if dx == -1:
                    t = t * mL
                elif dx == 1:
                    t = t * mR
                d = d + t * w2c[k]
            g = d[0:C, :] * d[C:2 * C, :]        # SimpleGate -> (C, HW)

            pad_ref[0:C, LPAD:LPAD + HW] = g
            for k in range(9):                   # stage 9 taps -> one K=9C MXU matmul
                dy, dx = TAPS[k]
                s = LPAD + dy * W + dx
                t = g if k == 4 else pad_ref[0:C, s:s + HW]
                if dx == -1:
                    t = t * mL1
                elif dx == 1:
                    t = t * mR1
                gcat_ref[k * C:(k + 1) * C, :] = t
            c3 = jnp.dot(w3, gcat_ref[...], preferred_element_type=jnp.float32) + b3
            y = x + c3 * beta

            # ---- branch 2: LN -> conv4(1x1) -> SimpleGate -> conv5(1x1)
            t2 = layer_norm(y, ln2w, ln2b)
            f = jnp.dot(w4, t2, preferred_element_type=jnp.float32) + b4     # (2C, HW)
            fg = f[0:C, :] * f[C:2 * C, :]
            c5 = jnp.dot(w5, fg, preferred_element_type=jnp.float32) + b5
            o_ref[bb] = y + c5 * gamma

    return kernel, LPAD


def _images_per_step(B, per_image_bytes, target_bytes=512 * 1024, max_bb=8):
    # Largest divisor of B, capped by max_bb and a per-step byte target, that
    # still leaves >= 2 grid steps so the pipeline / megacore have work.
    cap = max(1, min(max_bb, target_bytes // max(per_image_bytes, 1)))
    for bb in range(min(B, cap), 0, -1):
        if B % bb == 0 and (B // bb >= 2 or B == 1):
            return bb
    return 1


def nafblock_pallas(inp_nchw, p):
    B, C, H, W = inp_nchw.shape
    HW = H * W
    # NCHW is already channels-on-sublanes / spatial-on-lanes after a free reshape.
    x3 = inp_nchw.reshape(B, C, HW)

    BB = _images_per_step(B, C * HW * 4)
    kernel, LPAD = make_nafblock_kernel(H, W, C, BB)

    weights = (p['vecs'], p['w1'], p['w3'], p['w4'], p['w5'])
    io_spec = pl.BlockSpec((BB, C, HW), lambda b: (b, 0, 0))
    w_specs = [pl.BlockSpec(w.shape, lambda b: (0, 0)) for w in weights]

    out3 = pl.pallas_call(
        kernel,
        out_shape=jax.ShapeDtypeStruct((B, C, HW), jnp.float32),
        grid_spec=pltpu.PrefetchScalarGridSpec(
            num_scalar_prefetch=0,
            grid=(B // BB,),
            in_specs=[io_spec] + w_specs,
            out_specs=io_spec,
            scratch_shapes=[
                pltpu.VMEM((2 * C, HW + 2 * LPAD), jnp.float32),   # lane-halo pad
                pltpu.VMEM((9 * C, HW), jnp.float32),              # conv3 tap stack
            ]),
        compiler_params=pltpu.CompilerParams(
            dimension_semantics=("parallel",),
            vmem_limit_bytes=32 * 1024 * 1024),
        input_output_aliases={0: 0},            # out aliases x3 (same shape/dtype)
    )(x3, *weights)
    return out3.reshape(B, C, H, W)


def build_params(key, C):
    dw = 2 * C          # DW_Expand = 2
    ffn = 2 * C         # FFN_Expand = 2
    G = C // 4          # conv3 groups
    ipg = C // G        # in channels per group (= 4)
    opg = C // G        # out channels per group (= 4)
    ks = jax.random.split(key, 16)
    r = lambda k, s: 0.1 * jax.random.normal(k, s, jnp.float32)

    torch_p = dict(
        conv1_w=r(ks[0], (dw, C, 1, 1)),   conv1_b=r(ks[1], (dw,)),
        conv2_w=r(ks[2], (dw, 1, 3, 3)),   conv2_b=r(ks[3], (dw,)),
        conv3_w=r(ks[4], (C, ipg, 3, 3)),  conv3_b=r(ks[5], (C,)),
        conv4_w=r(ks[6], (ffn, C, 1, 1)),  conv4_b=r(ks[7], (ffn,)),
        conv5_w=r(ks[8], (C, ffn // 2, 1, 1)), conv5_b=r(ks[9], (C,)),
        ln1_w=1.0 + r(ks[10], (C,)), ln1_b=r(ks[11], (C,)),
        ln2_w=1.0 + r(ks[12], (C,)), ln2_b=r(ks[13], (C,)),
        # NOTE: the PyTorch __init__ zero-inits beta/gamma (forward would then
        # be the identity); use nonzero values so the full path is exercised.
        beta=r(ks[14], (1, C, 1, 1)), gamma=r(ks[15], (1, C, 1, 1)),
    )

    # ---- kernel-side layouts for (C, HW) channels-on-sublanes compute ----
    w1 = torch_p['conv1_w'][:, :, 0, 0]                    # (2C, C)
    w4 = torch_p['conv4_w'][:, :, 0, 0]                    # (2C, C)
    w5 = torch_p['conv5_w'][:, :, 0, 0]                    # (C, C)
    w2 = torch_p['conv2_w'][:, 0].reshape(dw, 9)           # (2C, 9), col k = ky*3+kx

    # Dense-ify grouped conv3 into W3(C, 9C): column k*C + i multiplies tap k
    # of input channel i (block-diagonal group structure).
    # TODO(synk): for large C keep a per-group formulation instead of densifying.
    wd = jnp.zeros((C, C, 3, 3), jnp.float32)
    for g in range(G):
        wd = wd.at[g * opg:(g + 1) * opg, g * ipg:(g + 1) * ipg].set(
            torch_p['conv3_w'][g * opg:(g + 1) * opg])
    w3 = jnp.transpose(wd, (0, 2, 3, 1)).reshape(C, 9 * C)

    padC = lambda v: jnp.concatenate([v, jnp.zeros((dw - v.shape[0],), jnp.float32)])
    cols = [None] * N_VEC
    cols[V_LN1W] = padC(torch_p['ln1_w']);  cols[V_LN1B] = padC(torch_p['ln1_b'])
    cols[V_LN2W] = padC(torch_p['ln2_w']);  cols[V_LN2B] = padC(torch_p['ln2_b'])
    cols[V_B1] = torch_p['conv1_b'];        cols[V_B2] = torch_p['conv2_b']
    cols[V_B3] = padC(torch_p['conv3_b']);  cols[V_B4] = torch_p['conv4_b']
    cols[V_B5] = padC(torch_p['conv5_b'])
    cols[V_BETA] = padC(torch_p['beta'][0, :, 0, 0])
    cols[V_GAMMA] = padC(torch_p['gamma'][0, :, 0, 0])
    for k in range(9):
        cols[V_W2 + k] = w2[:, k]
    vecs = jnp.stack(cols, axis=1)                         # (2C, 20)

    kern_p = dict(vecs=vecs, w1=w1, w3=w3, w4=w4, w5=w5)
    return torch_p, kern_p


def nafblock_ref(inp, p, C):
    """Pure-JAX NCHW reference mirroring the PyTorch forward."""
    dw = 2 * C

    def conv(x, w, b, pad, groups=1):
        o = jax.lax.conv_general_dilated(
            x, w, (1, 1), [(pad, pad), (pad, pad)],
            dimension_numbers=('NCHW', 'OIHW', 'NCHW'),
            feature_group_count=groups,
            precision=jax.lax.Precision.HIGHEST)
        return o + b[None, :, None, None]

    def ln(x, w, b):
        mu = jnp.mean(x, axis=1, keepdims=True)
        var = jnp.mean((x - mu) ** 2, axis=1, keepdims=True)
        return ((x - mu) / jnp.sqrt(var + EPS) * w[None, :, None, None]
                + b[None, :, None, None])

    def sg(x):
        a, b_ = jnp.split(x, 2, axis=1)
        return a * b_

    x = ln(inp, p['ln1_w'], p['ln1_b'])
    x = conv(x, p['conv1_w'], p['conv1_b'], 0)
    x = conv(x, p['conv2_w'], p['conv2_b'], 1, groups=dw)
    x = sg(x)
    x = conv(x, p['conv3_w'], p['conv3_b'], 1, groups=C // 4)
    y = inp + x * p['beta']
    x = ln(y, p['ln2_w'], p['ln2_b'])
    x = conv(x, p['conv4_w'], p['conv4_b'], 0)
    x = sg(x)
    x = conv(x, p['conv5_w'], p['conv5_b'], 0)
    return y + x * p['gamma']


if __name__ == "__main__":
    B, C, H, W = 2, 8, 16, 16   # c must be divisible by 4 (conv3 groups = c//4)
    key = jax.random.PRNGKey(0)
    p_key, x_key = jax.random.split(key)
    torch_p, kern_p = build_params(p_key, C)
    inp = jax.random.normal(x_key, (B, C, H, W), jnp.float32)

    out = nafblock_pallas(inp, kern_p)
    out = jax.block_until_ready(out)

    ref = nafblock_ref(inp, torch_p, C)
    assert out.shape == (B, C, H, W)
    np.testing.assert_allclose(np.asarray(out), np.asarray(ref), rtol=5e-3, atol=5e-3)
    print("KERNEL_OK")
</pallas_src>

<mosaic_0001>
module attributes {stable_mosaic.version = 11 : i64} {
  func.func @kernel(%arg0: i32, %arg1: memref<1x8x256xf32, #tpu.memory_space<vmem>>, %arg2: memref<16x20xf32, #tpu.memory_space<vmem>>, %arg3: memref<16x8xf32, #tpu.memory_space<vmem>>, %arg4: memref<8x72xf32, #tpu.memory_space<vmem>>, %arg5: memref<16x8xf32, #tpu.memory_space<vmem>>, %arg6: memref<8x8xf32, #tpu.memory_space<vmem>>, %arg7: memref<1x8x256xf32, #tpu.memory_space<vmem>>, %arg8: memref<16x512xf32, #tpu.memory_space<vmem>>, %arg9: memref<72x256xf32, #tpu.memory_space<vmem>>) attributes {dimension_semantics = [#tpu.dimension_semantics<parallel>], iteration_bounds = array<i64: 2>, scalar_prefetch = 0 : i64, scratch_operands = 2 : i64, tpu.core_type = #tpu.core_type<tc>, window_params = [{transform_indices = @transform_0, window_bounds = array<i64: 1, 8, 256>}, {pipeline_mode = #tpu.pipeline_mode<synchronous>, transform_indices = @transform_1, window_bounds = array<i64: 16, 20>}, {pipeline_mode = #tpu.pipeline_mode<synchronous>, transform_indices = @transform_2, window_bounds = array<i64: 16, 8>}, {pipeline_mode = #tpu.pipeline_mode<synchronous>, transform_indices = @transform_3, window_bounds = array<i64: 8, 72>}, {pipeline_mode = #tpu.pipeline_mode<synchronous>, transform_indices = @transform_4, window_bounds = array<i64: 16, 8>}, {pipeline_mode = #tpu.pipeline_mode<synchronous>, transform_indices = @transform_5, window_bounds = array<i64: 8, 8>}, {transform_indices = @transform_6, window_bounds = array<i64: 1, 8, 256>}]} {
    %0 = tpu.iota {dimensions = array<i32: 1>} : vector<1x256xi32>
    %c16_i32 = arith.constant 16 : i32
    %c0_i32 = arith.constant 0 : i32
    %1 = arith.cmpi eq, %c16_i32, %c0_i32 : i32
    %c1_i32 = arith.constant 1 : i32
    %2 = arith.select %1, %c1_i32, %c16_i32 : i32
    %3 = vector.broadcast %2 : i32 to vector<1x256xi32>
    %4 = arith.remsi %0, %3 : vector<1x256xi32>
    %c0_i32_0 = arith.constant 0 : i32
    %5 = vector.broadcast %c0_i32_0 : i32 to vector<1x256xi32>
    %6 = arith.cmpi ne, %4, %5 : vector<1x256xi32>
    %c0_i32_1 = arith.constant 0 : i32
    %7 = vector.broadcast %c0_i32_1 : i32 to vector<1x256xi32>
    %8 = arith.cmpi slt, %4, %7 : vector<1x256xi32>
    %c0_i32_2 = arith.constant 0 : i32
    %9 = arith.cmpi slt, %2, %c0_i32_2 : i32
    %10 = vector.broadcast %9 : i1 to vector<1x256xi1>
    %11 = vector.broadcast %10 : vector<1x256xi1> to vector<1x256xi1>
    %12 = arith.xori %8, %11 : vector<1x256xi1>
    %13 = arith.andi %12, %6 : vector<1x256xi1>
    %14 = vector.broadcast %2 : i32 to vector<1x256xi32>
    %15 = arith.addi %4, %14 : vector<1x256xi32>
    %16 = arith.select %13, %15, %4 : vector<1x256xi1>, vector<1x256xi32>
    %c1_i32_3 = arith.constant 1 : i32
    %17 = vector.broadcast %c1_i32_3 : i32 to vector<1x256xi32>
    %18 = arith.cmpi sge, %16, %17 : vector<1x256xi32>
    %19 = arith.extui %18 : vector<1x256xi1> to vector<1x256xi32>
    %20 = arith.sitofp %19 : vector<1x256xi32> to vector<1x256xf32>
    %21 = vector.shape_cast %20 : vector<1x256xf32> to vector<1x256xf32>
    %22 = vector.broadcast %21 : vector<1x256xf32> to vector<16x256xf32>
    %c14_i32 = arith.constant 14 : i32
    %23 = vector.broadcast %c14_i32 : i32 to vector<1x256xi32>
    %24 = arith.cmpi sle, %16, %23 : vector<1x256xi32>
    %25 = arith.extui %24 : vector<1x256xi1> to vector<1x256xi32>
    %26 = arith.sitofp %25 : vector<1x256xi32> to vector<1x256xf32>
    %27 = vector.shape_cast %26 : vector<1x256xf32> to vector<1x256xf32>
    %28 = vector.broadcast %27 : vector<1x256xf32> to vector<16x256xf32>
    %29 = vector.extract_strided_slice %22 {offsets = [0, 0], sizes = [8, 256], strides = [1, 1]} : vector<16x256xf32> to vector<8x256xf32>
    %30 = vector.extract_strided_slice %28 {offsets = [0, 0], sizes = [8, 256], strides = [1, 1]} : vector<16x256xf32> to vector<8x256xf32>
    %c0 = arith.constant 0 : index
    %c0_4 = arith.constant 0 : index
    %31 = vector.load %arg2[%c0, %c0_4] : memref<16x20xf32, #tpu.memory_space<vmem>>, vector<16x20xf32>
    %32 = vector.extract_strided_slice %31 {offsets = [0, 0], sizes = [8, 1], strides = [1, 1]} : vector<16x20xf32> to vector<8x1xf32>
    %33 = vector.extract_strided_slice %31 {offsets = [0, 1], sizes = [8, 1], strides = [1, 1]} : vector<16x20xf32> to vector<8x1xf32>
    %34 = vector.extract_strided_slice %31 {offsets = [0, 2], sizes = [8, 1], strides = [1, 1]} : vector<16x20xf32> to vector<8x1xf32>
    %35 = vector.extract_strided_slice %31 {offsets = [0, 3], sizes = [8, 1], strides = [1, 1]} : vector<16x20xf32> to vector<8x1xf32>
    %36 = vector.extract_strided_slice %31 {offsets = [0, 4], sizes = [16, 1], strides = [1, 1]} : vector<16x20xf32> to vector<16x1xf32>
    %37 = vector.extract_strided_slice %31 {offsets = [0, 5], sizes = [16, 1], strides = [1, 1]} : vector<16x20xf32> to vector<16x1xf32>
    %38 = vector.extract_strided_slice %31 {offsets = [0, 7], sizes = [16, 1], strides = [1, 1]} : vector<16x20xf32> to vector<16x1xf32>
    %39 = vector.extract_strided_slice %31 {offsets = [0, 6], sizes = [8, 1], strides = [1, 1]} : vector<16x20xf32> to vector<8x1xf32>
    %40 = vector.extract_strided_slice %31 {offsets = [0, 8], sizes = [8, 1], strides = [1, 1]} : vector<16x20xf32> to vector<8x1xf32>
    %41 = vector.extract_strided_slice %31 {offsets = [0, 9], sizes = [8, 1], strides = [1, 1]} : vector<16x20xf32> to vector<8x1xf32>
    %42 = vector.extract_strided_slice %31 {offsets = [0, 10], sizes = [8, 1], strides = [1, 1]} : vector<16x20xf32> to vector<8x1xf32>
    %43 = vector.extract_strided_slice %31 {offsets = [0, 11], sizes = [16, 1], strides = [1, 1]} : vector<16x20xf32> to vector<16x1xf32>
    %44 = vector.extract_strided_slice %31 {offsets = [0, 12], sizes = [16, 1], strides = [1, 1]} : vector<16x20xf32> to vector<16x1xf32>
    %45 = vector.extract_strided_slice %31 {offsets = [0, 13], sizes = [16, 1], strides = [1, 1]} : vector<16x20xf32> to vector<16x1xf32>
    %46 = vector.extract_strided_slice %31 {offsets = [0, 14], sizes = [16, 1], strides = [1, 1]} : vector<16x20xf32> to vector<16x1xf32>
    %47 = vector.extract_strided_slice %31 {offsets = [0, 15], sizes = [16, 1], strides = [1, 1]} : vector<16x20xf32> to vector<16x1xf32>
    %48 = vector.extract_strided_slice %31 {offsets = [0, 16], sizes = [16, 1], strides = [1, 1]} : vector<16x20xf32> to vector<16x1xf32>
    %49 = vector.extract_strided_slice %31 {offsets = [0, 17], sizes = [16, 1], strides = [1, 1]} : vector<16x20xf32> to vector<16x1xf32>
    %50 = vector.extract_strided_slice %31 {offsets = [0, 18], sizes = [16, 1], strides = [1, 1]} : vector<16x20xf32> to vector<16x1xf32>
    %51 = vector.extract_strided_slice %31 {offsets = [0, 19], sizes = [16, 1], strides = [1, 1]} : vector<16x20xf32> to vector<16x1xf32>
    %c0_5 = arith.constant 0 : index
    %c0_6 = arith.constant 0 : index
    %52 = vector.load %arg3[%c0_5, %c0_6] : memref<16x8xf32, #tpu.memory_space<vmem>>, vector<16x8xf32>
    %c0_7 = arith.constant 0 : index
    %c0_8 = arith.constant 0 : index
    %53 = vector.load %arg4[%c0_7, %c0_8] : memref<8x72xf32, #tpu.memory_space<vmem>>, vector<8x72xf32>
    %c0_9 = arith.constant 0 : index
    %c0_10 = arith.constant 0 : index
    %54 = vector.load %arg5[%c0_9, %c0_10] : memref<16x8xf32, #tpu.memory_space<vmem>>, vector<16x8xf32>
    %c0_11 = arith.constant 0 : index
    %c0_12 = arith.constant 0 : index
    %55 = vector.load %arg6[%c0_11, %c0_12] : memref<8x8xf32, #tpu.memory_space<vmem>>, vector<8x8xf32>
    %cst = arith.constant 0.000000e+00 : f32
    %56 = vector.broadcast %cst : f32 to vector<16x128xf32>
    %c0_13 = arith.constant 0 : index
    %c0_14 = arith.constant 0 : index
    %57 = vector.load %arg8[%c0_13, %c0_14] : memref<16x512xf32, #tpu.memory_space<vmem>>, vector<16x128xf32>
    tpu.vector_store %arg8[%c0_13, %c0_14], %56 {strides = array<i32>} : memref<16x512xf32, #tpu.memory_space<vmem>>, vector<16x128xf32>,
    %c0_15 = arith.constant 0 : index
    %c384 = arith.constant 384 : index
    %58 = vector.load %arg8[%c0_15, %c384] : memref<16x512xf32, #tpu.memory_space<vmem>>, vector<16x128xf32>
    tpu.vector_store %arg8[%c0_15, %c384], %56 {strides = array<i32>} : memref<16x512xf32, #tpu.memory_space<vmem>>, vector<16x128xf32>,
    %c0_16 = arith.constant 0 : index
    %c0_17 = arith.constant 0 : index
    %c0_18 = arith.constant 0 : index
    %59 = vector.load %arg1[%c0_16, %c0_17, %c0_18] : memref<1x8x256xf32, #tpu.memory_space<vmem>>, vector<1x8x256xf32>
    %60 = vector.shape_cast %59 : vector<1x8x256xf32> to vector<8x256xf32>
    %cst_19 = arith.constant dense<0.000000e+00> : vector<256xf32>
    %61 = vector.multi_reduction <add>, %60, %cst_19 [0] : vector<8x256xf32> to vector<256xf32>
    %62 = vector.shape_cast %61 : vector<256xf32> to vector<1x256xf32>
    %cst_20 = arith.constant 8.000000e+00 : f32
    %63 = vector.broadcast %cst_20 : f32 to vector<1x256xf32>
    %64 = arith.divf %62, %63 : vector<1x256xf32>
    %65 = vector.broadcast %64 : vector<1x256xf32> to vector<8x256xf32>
    %66 = arith.subf %60, %65 : vector<8x256xf32>
    %67 = arith.mulf %66, %66 : vector<8x256xf32>
    %cst_21 = arith.constant dense<0.000000e+00> : vector<256xf32>
    %68 = vector.multi_reduction <add>, %67, %cst_21 [0] : vector<8x256xf32> to vector<256xf32>
    %69 = vector.shape_cast %68 : vector<256xf32> to vector<1x256xf32>
    %cst_22 = arith.constant 8.000000e+00 : f32
    %70 = vector.broadcast %cst_22 : f32 to vector<1x256xf32>
    %71 = arith.divf %69, %70 : vector<1x256xf32>
    %72 = vector.broadcast %64 : vector<1x256xf32> to vector<8x256xf32>
    %73 = arith.subf %60, %72 : vector<8x256xf32>
    %cst_23 = arith.constant 9.99999997E-7 : f32
    %74 = vector.broadcast %cst_23 : f32 to vector<1x256xf32>
    %75 = arith.addf %71, %74 : vector<1x256xf32>
    %76 = math.rsqrt %75 : vector<1x256xf32>
    %77 = vector.broadcast %76 : vector<1x256xf32> to vector<8x256xf32>
    %78 = arith.mulf %73, %77 : vector<8x256xf32>
    %79 = vector.broadcast %32 : vector<8x1xf32> to vector<8x256xf32>
    %80 = arith.mulf %78, %79 : vector<8x256xf32>
    %81 = vector.broadcast %33 : vector<8x1xf32> to vector<8x256xf32>
    %82 = arith.addf %80, %81 : vector<8x256xf32>
    %cst_24 = arith.constant dense<0.000000e+00> : vector<16x256xf32>
    %83 = tpu.matmul %52, %82, %cst_24 {dimension_numbers = #tpu.dot_dimension_numbers<[1], [0], [0], [1], [0, 0, 1, 1], [], []>} : vector<16x8xf32>, vector<8x256xf32>, vector<16x256xf32> -> vector<16x256xf32>
    %84 = vector.broadcast %36 : vector<16x1xf32> to vector<16x256xf32>
    %85 = arith.addf %83, %84 : vector<16x256xf32>
    %c0_25 = arith.constant 0 : index
    %c128 = arith.constant 128 : index
    %86 = vector.load %arg8[%c0_25, %c128] : memref<16x512xf32, #tpu.memory_space<vmem>>, vector<16x256xf32>
    tpu.vector_store %arg8[%c0_25, %c128], %85 {strides = array<i32>} : memref<16x512xf32, #tpu.memory_space<vmem>>, vector<16x256xf32>,
    %87 = vector.broadcast %47 : vector<16x1xf32> to vector<16x256xf32>
    %88 = arith.mulf %85, %87 : vector<16x256xf32>
    %89 = vector.broadcast %37 : vector<16x1xf32> to vector<16x256xf32>
    %90 = arith.addf %88, %89 : vector<16x256xf32>
    %c0_26 = arith.constant 0 : index
    %c111 = arith.constant 111 : index
    %91 = vector.load %arg8[%c0_26, %c111] : memref<16x512xf32, #tpu.memory_space<vmem>>, vector<16x256xf32>
    %92 = arith.mulf %91, %22 : vector<16x256xf32>
    %93 = vector.broadcast %43 : vector<16x1xf32> to vector<16x256xf32>
    %94 = arith.mulf %92, %93 : vector<16x256xf32>
    %95 = arith.addf %90, %94 : vector<16x256xf32>
    %c0_27 = arith.constant 0 : index
    %c112 = arith.constant 112 : index
    %96 = vector.load %arg8[%c0_27, %c112] : memref<16x512xf32, #tpu.memory_space<vmem>>, vector<16x256xf32>
    %97 = vector.broadcast %44 : vector<16x1xf32> to vector<16x256xf32>
    %98 = arith.mulf %96, %97 : vector<16x256xf32>
    %99 = arith.addf %95, %98 : vector<16x256xf32>
    %c0_28 = arith.constant 0 : index
    %c113 = arith.constant 113 : index
    %100 = vector.load %arg8[%c0_28, %c113] : memref<16x512xf32, #tpu.memory_space<vmem>>, vector<16x256xf32>
    %101 = arith.mulf %100, %28 : vector<16x256xf32>
    %102 = vector.broadcast %45 : vector<16x1xf32> to vector<16x256xf32>
    %103 = arith.mulf %101, %102 : vector<16x256xf32>
    %104 = arith.addf %99, %103 : vector<16x256xf32>
    %c0_29 = arith.constant 0 : index
    %c127 = arith.constant 127 : index
    %105 = vector.load %arg8[%c0_29, %c127] : memref<16x512xf32, #tpu.memory_space<vmem>>, vector<16x256xf32>
    %106 = arith.mulf %105, %22 : vector<16x256xf32>
    %107 = vector.broadcast %46 : vector<16x1xf32> to vector<16x256xf32>
    %108 = arith.mulf %106, %107 : vector<16x256xf32>
    %109 = arith.addf %104, %108 : vector<16x256xf32>
    %c0_30 = arith.constant 0 : index
    %c129 = arith.constant 129 : index
    %110 = vector.load %arg8[%c0_30, %c129] : memref<16x512xf32, #tpu.memory_space<vmem>>, vector<16x256xf32>
    %111 = arith.mulf %110, %28 : vector<16x256xf32>
    %112 = vector.broadcast %48 : vector<16x1xf32> to vector<16x256xf32>
    %113 = arith.mulf %111, %112 : vector<16x256xf32>
    %114 = arith.addf %109, %113 : vector<16x256xf32>
    %c0_31 = arith.constant 0 : index
    %c143 = arith.constant 143 : index
    %115 = vector.load %arg8[%c0_31, %c143] : memref<16x512xf32, #tpu.memory_space<vmem>>, vector<16x256xf32>
    %116 = arith.mulf %115, %22 : vector<16x256xf32>
    %117 = vector.broadcast %49 : vector<16x1xf32> to vector<16x256xf32>
    %118 = arith.mulf %116, %117 : vector<16x256xf32>
    %119 = arith.addf %114, %118 : vector<16x256xf32>
    %c0_32 = arith.constant 0 : index
    %c144 = arith.constant 144 : index
    %120 = vector.load %arg8[%c0_32, %c144] : memref<16x512xf32, #tpu.memory_space<vmem>>, vector<16x256xf32>
    %121 = vector.broadcast %50 : vector<16x1xf32> to vector<16x256xf32>
    %122 = arith.mulf %120, %121 : vector<16x256xf32>
    %123 = arith.addf %119, %122 : vector<16x256xf32>
    %c0_33 = arith.constant 0 : index
    %c145 = arith.constant 145 : index
    %124 = vector.load %arg8[%c0_33, %c145] : memref<16x512xf32, #tpu.memory_space<vmem>>, vector<16x256xf32>
    %125 = arith.mulf %124, %28 : vector<16x256xf32>
    %126 = vector.broadcast %51 : vector<16x1xf32> to vector<16x256xf32>
    %127 = arith.mulf %125, %126 : vector<16x256xf32>
    %128 = arith.addf %123, %127 : vector<16x256xf32>
    %129 = vector.extract_strided_slice %128 {offsets = [0, 0], sizes = [8, 256], strides = [1, 1]} : vector<16x256xf32> to vector<8x256xf32>
    %130 = vector.extract_strided_slice %128 {offsets = [8, 0], sizes = [8, 256], strides = [1, 1]} : vector<16x256xf32> to vector<8x256xf32>
    %131 = arith.mulf %129, %130 : vector<8x256xf32>
    %c0_34 = arith.constant 0 : index
    %c128_35 = arith.constant 128 : index
    %132 = vector.load %arg8[%c0_34, %c128_35] : memref<16x512xf32, #tpu.memory_space<vmem>>, vector<8x256xf32>
    tpu.vector_store %arg8[%c0_34, %c128_35], %131 {strides = array<i32>} : memref<16x512xf32, #tpu.memory_space<vmem>>, vector<8x256xf32>,
    %c0_36 = arith.constant 0 : index
    %c111_37 = arith.constant 111 : index
    %133 = vector.load %arg8[%c0_36, %c111_37] : memref<16x512xf32, #tpu.memory_space<vmem>>, vector<8x256xf32>
    %134 = arith.mulf %133, %29 : vector<8x256xf32>
    %c0_38 = arith.constant 0 : index
    %c0_39 = arith.constant 0 : index
    %135 = vector.load %arg9[%c0_38, %c0_39] : memref<72x256xf32, #tpu.memory_space<vmem>>, vector<8x256xf32>
    tpu.vector_store %arg9[%c0_38, %c0_39], %134 {strides = array<i32>} : memref<72x256xf32, #tpu.memory_space<vmem>>, vector<8x256xf32>,
    %c0_40 = arith.constant 0 : index
    %c112_41 = arith.constant 112 : index
    %136 = vector.load %arg8[%c0_40, %c112_41] : memref<16x512xf32, #tpu.memory_space<vmem>>, vector<8x256xf32>
    %c8 = arith.constant 8 : index
    %c0_42 = arith.constant 0 : index
    %137 = vector.load %arg9[%c8, %c0_42] : memref<72x256xf32, #tpu.memory_space<vmem>>, vector<8x256xf32>
    tpu.vector_store %arg9[%c8, %c0_42], %136 {strides = array<i32>} : memref<72x256xf32, #tpu.memory_space<vmem>>, vector<8x256xf32>,
    %c0_43 = arith.constant 0 : index
    %c113_44 = arith.constant 113 : index
    %138 = vector.load %arg8[%c0_43, %c113_44] : memref<16x512xf32, #tpu.memory_space<vmem>>, vector<8x256xf32>
    %139 = arith.mulf %138, %30 : vector<8x256xf32>
    %c16 = arith.constant 16 : index
    %c0_45 = arith.constant 0 : index
    %140 = vector.load %arg9[%c16, %c0_45] : memref<72x256xf32, #tpu.memory_space<vmem>>, vector<8x256xf32>
    tpu.vector_store %arg9[%c16, %c0_45], %139 {strides = array<i32>} : memref<72x256xf32, #tpu.memory_space<vmem>>, vector<8x256xf32>,
    %c0_46 = arith.constant 0 : index
    %c127_47 = arith.constant 127 : index
    %141 = vector.load %arg8[%c0_46, %c127_47] : memref<16x512xf32, #tpu.memory_space<vmem>>, vector<8x256xf32>
    %142 = arith.mulf %141, %29 : vector<8x256xf32>
    %c24 = arith.constant 24 : index
    %c0_48 = arith.constant 0 : index
    %143 = vector.load %arg9[%c24, %c0_48] : memref<72x256xf32, #tpu.memory_space<vmem>>, vector<8x256xf32>
    tpu.vector_store %arg9[%c24, %c0_48], %142 {strides = array<i32>} : memref<72x256xf32, #tpu.memory_space<vmem>>, vector<8x256xf32>,
    %c32 = arith.constant 32 : index
    %c0_49 = arith.constant 0 : index
    %144 = vector.load %arg9[%c32, %c0_49] : memref<72x256xf32, #tpu.memory_space<vmem>>, vector<8x256xf32>
    tpu.vector_store %arg9[%c32, %c0_49], %131 {strides = array<i32>} : memref<72x256xf32, #tpu.memory_space<vmem>>, vector<8x256xf32>,
    %c0_50 = arith.constant 0 : index
    %c129_51 = arith.constant 129 : index
    %145 = vector.load %arg8[%c0_50, %c129_51] : memref<16x512xf32, #tpu.memory_space<vmem>>, vector<8x256xf32>
    %146 = arith.mulf %145, %30 : vector<8x256xf32>
    %c40 = arith.constant 40 : index
    %c0_52 = arith.constant 0 : index
    %147 = vector.load %arg9[%c40, %c0_52] : memref<72x256xf32, #tpu.memory_space<vmem>>, vector<8x256xf32>
    tpu.vector_store %arg9[%c40, %c0_52], %146 {strides = array<i32>} : memref<72x256xf32, #tpu.memory_space<vmem>>, vector<8x256xf32>,
    %c0_53 = arith.constant 0 : index
    %c143_54 = arith.constant 143 : index
    %148 = vector.load %arg8[%c0_53, %c143_54] : memref<16x512xf32, #tpu.memory_space<vmem>>, vector<8x256xf32>
    %149 = arith.mulf %148, %29 : vector<8x256xf32>
    %c48 = arith.constant 48 : index
    %c0_55 = arith.constant 0 : index
    %150 = vector.load %arg9[%c48, %c0_55] : memref<72x256xf32, #tpu.memory_space<vmem>>, vector<8x256xf32>
    tpu.vector_store %arg9[%c48, %c0_55], %149 {strides = array<i32>} : memref<72x256xf32, #tpu.memory_space<vmem>>, vector<8x256xf32>,
    %c0_56 = arith.constant 0 : index
    %c144_57 = arith.constant 144 : index
    %151 = vector.load %arg8[%c0_56, %c144_57] : memref<16x512xf32, #tpu.memory_space<vmem>>, vector<8x256xf32>
    %c56 = arith.constant 56 : index
    %c0_58 = arith.constant 0 : index
    %152 = vector.load %arg9[%c56, %c0_58] : memref<72x256xf32, #tpu.memory_space<vmem>>, vector<8x256xf32>
    tpu.vector_store %arg9[%c56, %c0_58], %151 {strides = array<i32>} : memref<72x256xf32, #tpu.memory_space<vmem>>, vector<8x256xf32>,
    %c0_59 = arith.constant 0 : index
    %c145_60 = arith.constant 145 : index
    %153 = vector.load %arg8[%c0_59, %c145_60] : memref<16x512xf32, #tpu.memory_space<vmem>>, vector<8x256xf32>
    %154 = arith.mulf %153, %30 : vector<8x256xf32>
    %c64 = arith.constant 64 : index
    %c0_61 = arith.constant 0 : index
    %155 = vector.load %arg9[%c64, %c0_61] : memref<72x256xf32, #tpu.memory_space<vmem>>, vector<8x256xf32>
    tpu.vector_store %arg9[%c64, %c0_61], %154 {strides = array<i32>} : memref<72x256xf32, #tpu.memory_space<vmem>>, vector<8x256xf32>,
    %c0_62 = arith.constant 0 : index
    %c0_63 = arith.constant 0 : index
    %156 = vector.load %arg9[%c0_62, %c0_63] : memref<72x256xf32, #tpu.memory_space<vmem>>, vector<72x256xf32>
    %cst_64 = arith.constant dense<0.000000e+00> : vector<8x256xf32>
    %157 = tpu.matmul %53, %156, %cst_64 {dimension_numbers = #tpu.dot_dimension_numbers<[1], [0], [0], [1], [0, 0, 1, 1], [], []>} : vector<8x72xf32>, vector<72x256xf32>, vector<8x256xf32> -> vector<8x256xf32>
    %158 = vector.broadcast %39 : vector<8x1xf32> to vector<8x256xf32>
    %159 = arith.addf %157, %158 : vector<8x256xf32>
    %160 = vector.broadcast %41 : vector<8x1xf32> to vector<8x256xf32>
    %161 = arith.mulf %159, %160 : vector<8x256xf32>
    %162 = arith.addf %60, %161 : vector<8x256xf32>
    %cst_65 = arith.constant dense<0.000000e+00> : vector<256xf32>
    %163 = vector.multi_reduction <add>, %162, %cst_65 [0] : vector<8x256xf32> to vector<256xf32>
    %164 = vector.shape_cast %163 : vector<256xf32> to vector<1x256xf32>
    %cst_66 = arith.constant 8.000000e+00 : f32
    %165 = vector.broadcast %cst_66 : f32 to vector<1x256xf32>
    %166 = arith.divf %164, %165 : vector<1x256xf32>
    %167 = vector.broadcast %166 : vector<1x256xf32> to vector<8x256xf32>
    %168 = arith.subf %162, %167 : vector<8x256xf32>
    %169 = arith.mulf %168, %168 : vector<8x256xf32>
    %cst_67 = arith.constant dense<0.000000e+00> : vector<256xf32>
    %170 = vector.multi_reduction <add>, %169, %cst_67 [0] : vector<8x256xf32> to vector<256xf32>
    %171 = vector.shape_cast %170 : vector<256xf32> to vector<1x256xf32>
    %cst_68 = arith.constant 8.000000e+00 : f32
    %172 = vector.broadcast %cst_68 : f32 to vector<1x256xf32>
    %173 = arith.divf %171, %172 : vector<1x256xf32>
    %174 = vector.broadcast %166 : vector<1x256xf32> to vector<8x256xf32>
    %175 = arith.subf %162, %174 : vector<8x256xf32>
    %cst_69 = arith.constant 9.99999997E-7 : f32
    %176 = vector.broadcast %cst_69 : f32 to vector<1x256xf32>
    %177 = arith.addf %173, %176 : vector<1x256xf32>
    %178 = math.rsqrt %177 : vector<1x256xf32>
    %179 = vector.broadcast %178 : vector<1x256xf32> to vector<8x256xf32>
    %180 = arith.mulf %175, %179 : vector<8x256xf32>
    %181 = vector.broadcast %34 : vector<8x1xf32> to vector<8x256xf32>
    %182 = arith.mulf %180, %181 : vector<8x256xf32>
    %183 = vector.broadcast %35 : vector<8x1xf32> to vector<8x256xf32>
    %184 = arith.addf %182, %183 : vector<8x256xf32>
    %cst_70 = arith.constant dense<0.000000e+00> : vector<16x256xf32>
    %185 = tpu.matmul %54, %184, %cst_70 {dimension_numbers = #tpu.dot_dimension_numbers<[1], [0], [0], [1], [0, 0, 1, 1], [], []>} : vector<16x8xf32>, vector<8x256xf32>, vector<16x256xf32> -> vector<16x256xf32>
    %186 = vector.broadcast %38 : vector<16x1xf32> to vector<16x256xf32>
    %187 = arith.addf %185, %186 : vector<16x256xf32>
    %188 = vector.extract_strided_slice %187 {offsets = [0, 0], sizes = [8, 256], strides = [1, 1]} : vector<16x256xf32> to vector<8x256xf32>
    %189 = vector.extract_strided_slice %187 {offsets = [8, 0], sizes = [8, 256], strides = [1, 1]} : vector<16x256xf32> to vector<8x256xf32>
    %190 = arith.mulf %188, %189 : vector<8x256xf32>
    %cst_71 = arith.constant dense<0.000000e+00> : vector<8x256xf32>
    %191 = tpu.matmul %55, %190, %cst_71 {dimension_numbers = #tpu.dot_dimension_numbers<[1], [0], [0], [1], [0, 0, 1, 1], [], []>} : vector<8x8xf32>, vector<8x256xf32>, vector<8x256xf32> -> vector<8x256xf32>
    %192 = vector.broadcast %40 : vector<8x1xf32> to vector<8x256xf32>
    %193 = arith.addf %191, %192 : vector<8x256xf32>
    %194 = vector.broadcast %42 : vector<8x1xf32> to vector<8x256xf32>
    %195 = arith.mulf %193, %194 : vector<8x256xf32>
    %196 = arith.addf %162, %195 : vector<8x256xf32>
    %c0_72 = arith.constant 0 : index
    %c0_73 = arith.constant 0 : index
    %c0_74 = arith.constant 0 : index
    %197 = vector.load %arg7[%c0_72, %c0_73, %c0_74] : memref<1x8x256xf32, #tpu.memory_space<vmem>>, vector<1x8x256xf32>
    %198 = vector.shape_cast %197 : vector<1x8x256xf32> to vector<8x256xf32>
    %199 = vector.shape_cast %196 : vector<8x256xf32> to vector<1x8x256xf32>
    tpu.vector_store %arg7[%c0_72, %c0_73, %c0_74], %199 {strides = array<i32>} : memref<1x8x256xf32, #tpu.memory_space<vmem>>, vector<1x8x256xf32>,
    return
  }
  func.func @transform_0(%arg0: i32) -> (i32, i32, i32) {
    %c0_i32 = arith.constant 0 : i32
    %c0_i32_0 = arith.constant 0 : i32
    %c0_i32_1 = arith.constant 0 : i32
    return %arg0, %c0_i32, %c0_i32_0 : i32, i32, i32
  }
  func.func @transform_1(%arg0: i32) -> (i32, i32) {
    %c0_i32 = arith.constant 0 : i32
    %c0_i32_0 = arith.constant 0 : i32
    %c0_i32_1 = arith.constant 0 : i32
    return %c0_i32, %c0_i32_0 : i32, i32
  }
  func.func @transform_2(%arg0: i32) -> (i32, i32) {
    %c0_i32 = arith.constant 0 : i32
    %c0_i32_0 = arith.constant 0 : i32
    %c0_i32_1 = arith.constant 0 : i32
    return %c0_i32, %c0_i32_0 : i32, i32
  }
  func.func @transform_3(%arg0: i32) -> (i32, i32) {
    %c0_i32 = arith.constant 0 : i32
    %c0_i32_0 = arith.constant 0 : i32
    %c0_i32_1 = arith.constant 0 : i32
    return %c0_i32, %c0_i32_0 : i32, i32
  }
  func.func @transform_4(%arg0: i32) -> (i32, i32) {
    %c0_i32 = arith.constant 0 : i32
    %c0_i32_0 = arith.constant 0 : i32
    %c0_i32_1 = arith.constant 0 : i32
    return %c0_i32, %c0_i32_0 : i32, i32
  }
  func.func @transform_5(%arg0: i32) -> (i32, i32) {
    %c0_i32 = arith.constant 0 : i32
    %c0_i32_0 = arith.constant 0 : i32
    %c0_i32_1 = arith.constant 0 : i32
    return %c0_i32, %c0_i32_0 : i32, i32
  }
  func.func @transform_6(%arg0: i32) -> (i32, i32, i32) {
    %c0_i32 = arith.constant 0 : i32
    %c0_i32_0 = arith.constant 0 : i32
    %c0_i32_1 = arith.constant 0 : i32
    return %arg0, %c0_i32, %c0_i32_0 : i32, i32, i32
  }
}

</mosaic_0001>

<bundles_post_ra>
// kernel: tpu_custom_call.1
= control target key start
LH: loop header
LB: loop body
LE: loop exit
PB: predicated region body
PF: predicated region fallthrough
CT: control target
= control target key end

     0   :  { %11 = vsyncpa [#allocation5], 0  ;;  %s2573_s0 = inlined_call_operand.hbm [shape: f32[2,8,256], index: 0, kind: input, shape index: {}, may-alias: {0,6}]   ;;  %s2574_s1 = inlined_call_operand.vmem [shape: f32[16,20], index: 1, kind: input, shape index: {}]   ;;  %s2575_s2 = inlined_call_operand.vmem [shape: f32[16,8], index: 2, kind: input, shape index: {}]   ;;  %s2576_s3 = inlined_call_operand.vmem [shape: f32[8,72], index: 3, kind: input, shape index: {}]   ;;  %s2577_s4 = inlined_call_operand.vmem [shape: f32[16,8], index: 4, kind: input, shape index: {}]   ;;  %s2578_s5 = inlined_call_operand.vmem [shape: f32[8,8], index: 5, kind: input, shape index: {}]   ;;  %s2579_s6 = inlined_call_operand.hbm [shape: f32[2,8,256], index: 6, kind: output, shape index: {}, may-alias: {0,6}]  }
   0x1   :  { %13 = vsyncpa [#allocation5 + $0x1], 0 }
   0x2   :  { %14 = vsyncpa [#allocation6], 0 }
   0x3   :  { %16 = vsyncpa [#allocation6 + $0x1], 0  ;;  %s1852_s21 = smov 0   ;;  %s1854_s22 = smov 0  }
   0x4   :  { %s1856_s23 = smov 0   ;;  %s1858_s24 = smov 0  }
   0x5 LB: > { %s1873_s25 = sadd.s32 4294967295, %s1785_s24   ;;  %s1465_s26 = sadd.s32 4294967294, %s1785_s24   ;;  %s1785_s24 = sphi %s1858_s24, %s2589_s24   ;;  %s1781_s23 = sphi %s1856_s23, %s2588_s23   ;;  %s1777_s22 = sphi %s1854_s22, %s2587_s22   ;;  %s1773_s21 = sphi %s1852_s21, %s2586_s21  }
   0x6   : > { %s1877_s27 = sadd.s32 1, %s1785_s24   ;;  %s29_s28 = sadd.s32 1, %s1781_s23 }
   0x7   : > { %s26_s29 = ssub.s32 %s1785_s24, %s1877_s27  ;;  %p36_p0 = scmp.ne.s32.totalorder %s1781_s23, %s1777_s22 }
   0x8   : > { %p27_p1 = scmp.eq.s32.totalorder %s26_s29, 0  ;;  %p37_p2 = scmp.eq.s32.totalorder %s1785_s24, 0 }
   0x9   : > { %p42_p3 = scmp.ne.s32.totalorder %s1777_s22, %s1773_s21  ;;  %p43_p4 = scmp.eq.s32.totalorder %s1873_s25, 0 }
   0xa   : > { %s1889_s30 = scalar_select %p27_p1, %s1781_s23, %s29_s28  }
   0xb   : > { %p1891_p5 = por %p37_p2, %p36_p0  ;;  %p1895_p6 = por %p43_p4, %p42_p3 }
   0xc   : > { %p171_p7 = scmp.eq.s32.totalorder %s1873_s25, 1  ;;  %p177_p8 = scmp.eq.s32.totalorder %s1465_s26, 1 }
   0xd   : > { %p1509_p10 = scmp.lt.s32.totalorder %s1785_s24, 2  ;;  %s212_s11 = sand.u32 1, %s1781_s23  }
   0xe   : > { %p1902_p11 = por %p171_p7, %p36_p0  ;;  %p1906_p12 = por %p177_p8, %p42_p3 }
   0xf   : > { %s1495_s12 = sshll.u32 %s1785_s24, 4  ;;  %s1468_s13 = sshll.u32 %s212_s11, 4 }
  0x10   : > { %s221_s16 = scalar_lea.hbm %s2573_s0, %s1495_s12  ;;  %s216_s18 = scalar_lea.vmem [#allocation4], %s1468_s13 }
  0x11   : > { %s223_s17 = sshll.u32 %s221_s16, 4  ;;  %s225_s19 = sshll.u32 %s216_s18, 4  ;;  %s224_s17 = int_to_ptr.hbm [resolvable:$true] %s223_s17  ;;  %s226_s19 = int_to_ptr.vmem [resolvable:$true] %s225_s19 }
  0x12   : > { %p1917_p13 = pnand %p1509_p10, %p1891_p5  ;;  %p1471_p0 = scmp.ge.s32.totalorder %s1785_s24, 1 }
  0x13   : > { %p230_p1 = scmp.lt.s32.totalorder %s1785_s24, 3  ;;  %s213_s26 = scalar_lea.sflag [#allocation5], %s212_s11 }
  0x14   : > { %s1689_s28 = sshra.s32 %s224_s17, 4  ;;  %p1693_p3 = pneg %p1917_p13  ;;  %s1690_s28 = int_to_ptr.hbm [resolvable:$true] %s1689_s28 }
  0x15   : > { %s1691_s29 = scalar_lea.hbm %s1690_s28, 16  ;;  %s1696_s7 = scalar_lea.hbm %s2573_s0, 32 }
  0x16   : > { %p1692_p2 = scmp.ne.s32.totalorder %s1690_s28, %s1691_s29  ;;  %p1697_p5 = scmp.lt.s32.totalorder %s1690_s28, %s2573_s0 }
  0x17   : > { %p1698_p8 = scmp.lt.s32.totalorder %s1696_s7, %s1691_s29 }
  0x18   : > { %p1694_p4 = pnand %p1693_p3, %p1692_p2 }
  0x19   : > { %p1699_p10 = por %p1698_p8, %p1697_p5 }
  0x1a   : > { %p1695_p7 = pneg %p1694_p4 }
  0x1c   : > { %p1700_p9 = pnand %p1699_p10, %p1695_p7 }
  0x1e   : > { %1703 = shalt.err (!%p1700_p9)
}
  0x1f   : > { %1504 = dma.hbm_to_vmem [thread:$0]  (!%p1917_p13), %s224_s17, 256, %s226_s19, %s213_s26  }
  0x20   : > { %p231_p2 = pnand %p1471_p0, %p230_p1 }
  0x21   : > { %s1938_s11 = sand.u32 (!%p231_p2), 1, %s1777_s22  }
  0x22   : > { %234 = sbr.rel (%p231_p2) target bundleno = 1154 (0x482), region = 44  ;;  %s1472_s16 = sshll.u32 (!%p231_p2), %s1938_s11, 4 }
  0x23   : > { %s237_s18 = scalar_lea.sflag (!%p231_p2), [#allocation5], %s1938_s11  ;;  %s1944_s28 = scalar_lea.vmem (!%p231_p2), [#allocation4], %s1472_s16 }
  0x27   : > { %1764 = dma.done.wait (%p1895_p6), %s237_s18, 256  }
  0x28   : > { %1766 = vsyncadd (%p1895_p6), %s237_s18, 4294967040  ;;  %v1787_v0 = vmov 0   ;;  %v1788_v1 = vmov 4   ;;  %v1789_v2 = vmov 11   ;;  %v1953_v3 = vld [vmem:[%s2574_s1] sm:$0xff]  ;;  %v1961_v4 = vld [vmem:[%s2574_s1 + $0x8] sm:$0xff]  ;;  %v270_v14 = vlaneseq }
  0x29   : > { %1573 = vset.pattern.permute.xlu0 %v1787_v0  ;;  %1575 = vset.pattern.permute.xlu1 %v1788_v1  ;;  %v1790_v5 = vmov 1   ;;  %v1791_v6 = vmov 13   ;;  %v1792_v7 = vmov 12   ;;  %v1793_v8 = vmov 8.0   ;;  %v321_v10 = vld [vmem:[%s1944_s28] sm:$0xff]  ;;  %v322_v11 = vld [vmem:[%s1944_s28 + $0x8] sm:$0xff] }
  0x2a   : > { %1576 = vset.pattern.permute.xlu2 %v1789_v2  ;;  %388 = vperm.xlu0 %1573, %v1953_v3   ;;  %1675 = vrcp.f32 %v1793_v8  ;;  %v1794_v9 = vmov 17   ;;  %v323_v12 = vrot.slane %v321_v10, 4  ;;  %v329_v13 = vrot.slane %v322_v11, 4  ;;  %s1796_s26 = smov 111   ;;  %s1798_s29 = smov 1  }
  0x2b   : > { %400 = vperm.xlu1 %1575, %v1953_v3   ;;  %513 = vperm.xlu2 %1576, %v1953_v3   ;;  %v271_v18 = vand.u32 127, %v270_v14  ;;  %v1795_v29 = vmov 0.0   ;;  %v1797_v41 = vmov 14   ;;  %s1799_s12 = smov 113   ;;  %s1800_s13 = smov 15   ;;  %v1801_v49 = vmov 16  }
  0x2c   : > { %v324_v16 = vadd.f32 %v323_v12, %v321_v10  ;;  %v330_v17 = vadd.f32 %v329_v13, %v322_v11  ;;  %s1802_s7 = smov 127   ;;  %v1803_v59 = vmov 18   ;;  %s1805_s14 = smov 17   ;;  %v1806_v14 = vmov 15  }
  0x2d   : > { %v272_v22 = vadd.s32 128, %v271_v18  ;;  %v277_v23 = vand.u32 15, %v271_v18  ;;  %vm408_vm11 = vcmask 64512   ;;  %s1808_s20 = smov 16   ;;  %s1809_s8 = smov 112   ;;  %vm501_vm12 = vcmask 908288  }
  0x2e   : > { %v325_v20 = vrot.slane %v324_v16, 2  ;;  %v331_v21 = vrot.slane %v330_v17, 2  ;;  %vm608_vm13 = vcmask 924672   ;;  %vm668_vm14 = vcmask 1039360   ;;  %s1739_s17 = scalar_lea.hbm %s2579_s6, 32 }
  0x2f   : > { %v284_v27 = vand.u32 15, %v272_v22  ;;  %vm297_vm0 = vcmp.ge.s32.totalorder %v277_v23, 1  ;;  %vm303_vm2 = vcmp.le.s32.totalorder %v277_v23, 14  ;;  %vm711_vm15 = vcmask 7168  }
  0x30   : > { %v1676_v15 = vpop.eup %1675  ;;  %v326_v25 = vadd.f32 %v325_v20, %v324_v16  ;;  %v332_v26 = vadd.f32 %v331_v21, %v330_v17  ;;  %v1474_v30 = vsel %vm297_vm0, 1.0, %v1795_v29  ;;  %v1476_v36 = vsel %vm303_vm2, 1.0, %v1795_v29 }
  0x31   : > { %v336_v19 = vmul.f32 8.0, %v1676_v15  ;;  %vm298_vm1 = vcmp.ge.s32.totalorder %v284_v27, 1  ;;  %vm304_vm3 = vcmp.le.s32.totalorder %v284_v27, 14  ;;  %vm340_vm4 = vweird.f32 %v1676_v15 }
  0x32   : > { %1574 = vset.pattern.permute.xlu0 %v1790_v5  ;;  %v327_v31 = vrot.slane %v326_v25, 1  ;;  %v333_v32 = vrot.slane %v332_v26, 1  ;;  %v1475_v33 = vsel %vm298_vm1, 1.0, %v1795_v29  ;;  %v1477_v37 = vsel %vm304_vm3, 1.0, %v1795_v29 }
  0x33   : > { %405 = vperm.xlu1 %1575, %v1961_v4   ;;  %394 = vperm.xlu0 %1574, %v1953_v3   ;;  %v337_v24 = vsub.f32 1.0, %v336_v19  ;;  %v1578_v35 = vpack.i.bf16 %v1475_v33, %v1474_v30  ;;  %v1976_v39 = vpack.i.bf16 %v1477_v37, %v1476_v36  ;;  %vm651_vm0 = vcmask 121856  }
  0x34   : > { %1596 = vset.pattern.permute.xlu2 %v1791_v6  ;;  %v328_v38 = vadd.f32 %v327_v31, %v326_v25  ;;  %v334_v40 = vadd.f32 %v333_v32, %v332_v26  ;;  %vm544_vm1 = vcmask 138240   ;;  %vm589_vm2 = vcmask 130048  }
  0x35   : > { %v338_v28 = vmul.f32 %v1676_v15, %v337_v24  ;;  %1579 = vrot.lane.b32.xlu2 %v1578_v35, %s1796_s26  ;;  %vm878_vm3 = vcmask 916480  }
  0x37   : > { %v339_v34 = vadd.f32 %v1676_v15, %v338_v28 }
  0x39   : > { %v1981_v42 = vsel %vm340_vm4, %v1676_v15, %v339_v34  ;;  %v1807_v15 = vmov 5   ;;  %vm1139_vm4 = vcmask 588800  }
  0x3a   : > { %v342_v43 = vmul.f32 %v1981_v42, %v328_v38  ;;  %v343_v44 = vmul.f32 %v1981_v42, %v334_v40 }
  0x3b   : > { %1577 = vset.pattern.permute.xlu1 %v1789_v2  ;;  %1588 = vset.pattern.permute.xlu0 %v1792_v7 }
  0x3c   : > { %517 = vperm.xlu1 %1577, %v1961_v4   ;;  %558 = vperm.xlu0 %1588, %v1953_v3   ;;  %v1986_v45 = vsub.f32 %v321_v10, %v342_v43  ;;  %v1988_v46 = vsub.f32 %v322_v11, %v343_v44 }
  0x3d   : > { %1584 = vrot.lane.b32.xlu2 %v1976_v39, %s1799_s12 }
  0x3e   : > { %v346_v47 = vmul.f32 %v1986_v45, %v1986_v45  ;;  %v347_v48 = vmul.f32 %v1988_v46, %v1988_v46 }
  0x40   : > { %v348_v50 = vrot.slane %v346_v47, 4  ;;  %v354_v51 = vrot.slane %v347_v48, 4 }
  0x42   : > { %v349_v52 = vadd.f32 %v348_v50, %v346_v47  ;;  %v355_v53 = vadd.f32 %v354_v51, %v347_v48 }
  0x44   : > { %1589 = vset.pattern.permute.xlu1 %v1792_v7  ;;  %1611 = vset.pattern.permute.xlu0 %v1794_v9  ;;  %v350_v54 = vrot.slane %v349_v52, 2  ;;  %v356_v55 = vrot.slane %v355_v53, 2 }
  0x45   : > { %562 = vperm.xlu1 %1589, %v1961_v4   ;;  %1598 = vrot.lane.b32.xlu0 %v1976_v39, %s1798_s29 }
  0x46   : > { %1591 = vrot.lane.b32.xlu2 %v1578_v35, %s1802_s7  ;;  %v351_v56 = vadd.f32 %v350_v54, %v349_v52  ;;  %v357_v57 = vadd.f32 %v356_v55, %v355_v53 }
  0x48   : > { %v352_v58 = vrot.slane %v351_v56, 1  ;;  %v358_v60 = vrot.slane %v357_v57, 1 }
  0x4a   : > { %v353_v61 = vadd.f32 %v352_v58, %v351_v56  ;;  %v359_v62 = vadd.f32 %v358_v60, %v357_v57 }
  0x4c   : > { %v360_v63 = vmul.f32 %v353_v61, %v1981_v42  ;;  %v361_v0 = vmul.f32 %v359_v62, %v1981_v42 }
  0x4d   : > { %1595 = vset.pattern.permute.xlu1 %v1791_v6  ;;  %1605 = vrot.lane.b32.xlu0 %v1578_v35, %s1800_s13  ;;  %v312_v35 = vld [vmem:[%s2575_s2 + $0x8] sm:$0xff] }
  0x4e   : > { %620 = vperm.xlu1 %1595, %v1953_v3   ;;  %624 = vperm.xlu2 %1596, %v1961_v4   ;;  %v362_v1 = vadd.f32 1e-06, %v360_v63  ;;  %v363_v2 = vadd.f32 1e-06, %v361_v0 }
  0x50   : > { %1677 = vrsqrt.f32 %v362_v1  ;;  %vm370_vm5 = vweird.f32 %v362_v1  ;;  %vm380_vm7 = vweird.f32 %v363_v2 }
  0x51   : > { %1679 = vrsqrt.f32 %v363_v2 }
  0x55   : > { %803 = vperm.xlu0 %1611, %v1953_v3  }
  0x56   : > { %1602 = vset.pattern.permute.xlu1 %v1797_v41  ;;  %1603 = vset.pattern.permute.xlu2 %v1797_v41  ;;  %v1678_v5 = vpop.eup %1677 }
  0x57   : > { %680 = vperm.xlu1 %1602, %v1953_v3   ;;  %684 = vperm.xlu2 %1603, %v1961_v4   ;;  %v1680_v6 = vpop.eup %1679  ;;  %v365_v7 = vmul.f32 %v1678_v5, %v362_v1  ;;  %vm371_vm6 = vweird.f32 %v1678_v5 }
  0x58   : > { %v375_v8 = vmul.f32 %v1680_v6, %v363_v2  ;;  %vm381_vm8 = vweird.f32 %v1680_v6  ;;  %vm372_vm9 = vmor %vm370_vm5, %vm371_vm6 }
  0x59   : > { %v366_v10 = vmul.f32 %v1678_v5, %v365_v7  ;;  %vm382_vm10 = vmor %vm380_vm7, %vm381_vm8 }
  0x5a   : > { %v376_v11 = vmul.f32 %v1680_v6, %v375_v8 }
  0x5b   : > { %v367_v12 = vmul.f32 0.5, %v366_v10 }
  0x5c   : > { %v377_v13 = vmul.f32 0.5, %v376_v11 }
  0x5d   : > { %v368_v16 = vsub.f32 1.5, %v367_v12 }
  0x5e   : > { %v378_v17 = vsub.f32 1.5, %v377_v13 }
  0x5f   : > { %1609 = vset.pattern.permute.xlu1 %v1801_v49  ;;  %1610 = vset.pattern.permute.xlu2 %v1801_v49  ;;  %v369_v18 = vmul.f32 %v1678_v5, %v368_v16 }
  0x60   : > { %745 = vperm.xlu1 %1609, %v1953_v3   ;;  %749 = vperm.xlu2 %1610, %v1961_v4   ;;  %v379_v19 = vmul.f32 %v1680_v6, %v378_v17 }
  0x61   : > { %v373_v22 = vsel %vm372_vm9, %v1678_v5, %v369_v18 }
  0x62   : > { %v383_v23 = vsel %vm382_vm10, %v1680_v6, %v379_v19  ;;  %v384_v24 = vmul.f32 %v373_v22, %v1986_v45 }
  0x63   : > { %v385_v25 = vmul.f32 %v383_v23, %v1988_v46 }
  0x68   : > { %1612 = vset.pattern.permute.xlu1 %v1794_v9  ;;  %1619 = vset.pattern.permute.xlu2 %v1803_v59  ;;  %v1804_v9 = vmov 19  }
  0x69   : > { %807 = vperm.xlu1 %1612, %v1961_v4   ;;  %1620 = vset.pattern.permute.xlu0 %v1804_v9 }
  0x6a   : > { %906 = vperm.xlu0 %1620, %v1953_v3   ;;  %1614 = vrot.lane.b32.xlu2 %v1976_v39, %s1805_s14 }
  0x71   : > { %1618 = vset.pattern.permute.xlu1 %v1803_v59 }
  0x72   : > { %847 = vperm.xlu1 %1618, %v1953_v3   ;;  %1625 = vset.pattern.permute.xlu0 %v1807_v15 }
  0x73   : > { %482 = vperm.xlu0 %1625, %v1961_v4   ;;  %851 = vperm.xlu2 %1619, %v1961_v4  }
  0x7a   : > { %1621 = vset.pattern.permute.xlu1 %v1804_v9 }
  0x7b   : > { %910 = vperm.xlu1 %1621, %v1961_v4   ;;  %1622 = vset.pattern.permute.xlu2 %v1806_v14 }
  0x7c   : > { %466 = vperm.xlu2 %1622, %v1953_v3  }
  0x83   : > { %1623 = vset.pattern.permute.xlu1 %v1806_v14 }
  0x84   : > { %470 = vperm.xlu1 %1623, %v1961_v4   ;;  %v311_v4 = vld [vmem:[%s2575_s2] sm:$0xff]  ;;  %1624 = vset.pattern.permute.xlu2 %v1807_v15 }
  0x85   : > { %v2025_v33 = vpop.permute.xlu2 %513  ;;  %478 = vperm.xlu2 %1624, %v1953_v3  }
  0x8f   : > { %v2039_v37 = vpop.permute.xlu2 %1579 }
  0x90   : > { %v1581_v39 = vunpack.i.l.bf16 %v2039_v37 }
  0x92   : > { %v2048_v40 = vmul.f32 0.0, %v1581_v39 }
  0x94   : > { %v520_v43 = vmul.f32 %v2025_v33, %v2048_v40 }
  0x96   : > { %532 = vrot.lane.b32.xlu1 %v520_v43, %s1805_s14 }
  0x97   : > { %v2053_v44 = vpop.permute.xlu2 %1584 }
  0x98   : > { %v1586_v46 = vunpack.i.l.bf16 %v2053_v44 }
  0x9a   : > { %v2064_v48 = vmul.f32 0.0, %v1586_v46 }
  0x9c   : > { %v389_v20 = vpop.permute.xlu0 %388 }
  0x9d   : > { %v2015_v21 = vpop.permute.xlu1 %400  ;;  %v391_v26 = vmul.f32 %v389_v20, %v384_v24  ;;  %v392_v27 = vmul.f32 %v389_v20, %v385_v25 }
  0xa0   : > { %v2067_v49 = vpop.permute.xlu2 %1591 }
  0xa1   : > { %v1593_v54 = vunpack.i.l.bf16 %v2067_v49 }
  0xa3   : > { %v2083_v56 = vmul.f32 0.0, %v1593_v54 }
  0xa5   : > { %v2019_v28 = vpop.permute.xlu1 %405  ;;  %v395_v30 = vpop.permute.xlu0 %394 }
  0xa6   : > { %v397_v31 = vadd.f32 %v395_v30, %v391_v26  ;;  %v398_v32 = vadd.f32 %v395_v30, %v392_v27  ;;  %v2150_v27 = vunpack.i.h.bf16 %v2039_v37  ;;  %v2179_v37 = vunpack.i.h.bf16 %v2053_v44 }
  0xa8   : > { %430 = vmatpush.msra.mxu0 %v397_v31  ;;  %453 = vmatpush.msra.mxu1 %v398_v32  ;;  %v2074_v52 = vpop.permute.xlu2 %624 }
  0xa9   : > { %1478 = vmatmul.msk.f32.vlgmr.msra.gmra.mxu0 %vm408_vm11, %v311_v4  ;;  %1480 = vmatmul.msk.f32.vlgmr.msra.gmra.mxu1 %vm408_vm11, %v311_v4  ;;  %v630_v55 = vmul.f32 %v2074_v52, %v2064_v48 }
  0xae   : > { %v2029_v34 = vpop.permute.xlu1 %517  ;;  %v2035_v36 = vpop.permute.xlu0 %558 }
  0xaf   : > { %v565_v38 = vmul.f32 0.0, %v2035_v36  ;;  %v523_v47 = vmul.f32 %v2029_v34, %v2048_v40 }
  0xb1   : > { %1479 = vmatmul.msk.f32.gmra.mxu0 %vm408_vm11, %v312_v35  ;;  %1481 = vmatmul.msk.f32.gmra.mxu1 %vm408_vm11, %v312_v35  ;;  %v2093_v60 = vpop.permute.xlu2 %684 }
  0xb2   : > { %577 = vrot.lane.b32.xlu2 %v565_v38, %s1808_s20  ;;  %v690_v61 = vmul.f32 %v2093_v60, %v2083_v56 }
  0xb7   : > { %v2044_v3 = vpop.permute.xlu1 %562  ;;  %v2091_v59 = vpop.permute.xlu0 %1598 }
  0xb8   : > { %v568_v41 = vmul.f32 0.0, %v2044_v3  ;;  %v1601_v62 = vunpack.i.h.bf16 %v2091_v59 }
  0xba   : > { %583 = vrot.lane.b32.xlu2 %v568_v41, %s1808_s20  ;;  %v2102_v1 = vmul.f32 0.0, %v1601_v62  ;;  %v2109_v6 = vpop.permute.xlu2 %749 }
  0xbc   : > { %v757_v7 = vmul.f32 %v2109_v6, %v2102_v1 }
  0xbf   : > { %v2106_v5 = vpop.permute.xlu0 %1605 }
  0xc0   : > { %v2057_v45 = vpop.permute.xlu1 %620  ;;  %v1608_v8 = vunpack.i.h.bf16 %v2106_v5 }
  0xc1   : > { %v627_v51 = vmul.f32 %v2057_v45, %v2064_v48 }
  0xc2   : > { %538 = vrot.lane.b32.xlu2 %v523_v47, %s1805_s14  ;;  %v2116_v9 = vmul.f32 0.0, %v1608_v8 }
  0xc4   : > { %v2123_v12 = vpop.permute.xlu2 %1614 }
  0xc5   : > { %v1617_v15 = vunpack.i.h.bf16 %v2123_v12 }
  0xc7   : > { %v2119_v10 = vpop.permute.xlu0 %803  ;;  %v2135_v17 = vmul.f32 0.0, %v1617_v15 }
  0xc8   : > { %v812_v11 = vmul.f32 %v2119_v10, %v2116_v9 }
  0xc9   : > { %v2069_v50 = vpop.permute.xlu1 %680 }
  0xca   : > { %639 = vrot.lane.b32.xlu2 %v627_v51, %s1800_s13  ;;  %v687_v57 = vmul.f32 %v2069_v50, %v2083_v56 }
  0xcd   : > { %v2129_v14 = vpop.permute.xlu2 %851 }
  0xce   : > { %v859_v16 = vmul.f32 0.0, %v2129_v14 }
  0xd2   : > { %v2076_v53 = vpop.permute.xlu1 %745  ;;  %645 = vrot.lane.b32.xlu2 %v630_v55, %s1800_s13 }
  0xd3   : > { %v754_v2 = vmul.f32 %v2076_v53, %v2102_v1 }
  0xd6   : > { %v467_v20 = vpop.permute.xlu2 %466 }
  0xda   : > { %699 = vrot.lane.b32.xlu2 %v687_v57, %s1798_s29 }
  0xdb   : > { %v2088_v58 = vpop.permute.xlu1 %807 }
  0xdc   : > { %v815_v13 = vmul.f32 %v2088_v58, %v2116_v9  ;;  %v2138_v18 = vpop.permute.xlu0 %906 }
  0xdd   : > { %v915_v19 = vmul.f32 %v2138_v18, %v2135_v17 }
  0xdf   : > { %v479_v30 = vpop.permute.xlu2 %478 }
  0xe2   : > { %705 = vrot.lane.b32.xlu2 %v690_v61, %s1798_s29 }
  0xe4   : > { %v848_v63 = vpop.permute.xlu1 %847 }
  0xe5   : > { %v856_v0 = vmul.f32 0.0, %v848_v63 }
  0xe7   : > { %870 = vrot.lane.b32.xlu1 %v856_v0, %s1809_s8 }
  0xed   : > { %v2143_v22 = vpop.permute.xlu1 %910 }
  0xef   : > { %768 = vrot.lane.b32.xlu1 %v754_v2, %s1802_s7 }
  0xf6   : > { %v471_v47 = vpop.permute.xlu1 %470 }
  0xf7   : > { %774 = vrot.lane.b32.xlu1 %v757_v7, %s1802_s7 }
  0xff   : > { %826 = vrot.lane.b32.xlu1 %v812_v11, %s1799_s12 }
 0x107   : > { %832 = vrot.lane.b32.xlu1 %v815_v13, %s1799_s12 }
 0x10f   : > { %876 = vrot.lane.b32.xlu1 %v859_v16, %s1809_s8  ;;  %v2191_v16 = vunpack.i.l.bf16 %v2091_v59 }
 0x117   : > { %929 = vrot.lane.b32.xlu1 %v915_v19, %s1796_s26 }
 0x126   : > { %v432_v23 = vpop.f32.mrf.mxu0  ;;  %v455_v24 = vpop.f32.mrf.mxu1 }
 0x127   : > { %v433_v25 = vadd.f32 %v432_v23, %v2015_v21  ;;  %v2147_v26 = vadd.f32 %v455_v24, %v2015_v21  ;;  %v2166_v21 = vsel %vm501_vm12, %v1581_v39, %v2150_v27  ;;  %v2210_v23 = vunpack.i.l.bf16 %v2106_v5  ;;  %v2265_v5 = vpop.permute.xlu1 %532 }
 0x129   : > { %v473_v31 = vmul.f32 %v467_v20, %v433_v25  ;;  %v474_v32 = vmul.f32 %v467_v20, %v2147_v26  ;;  %v566_v4 = vmul.f32 %v2035_v36, %v433_v25  ;;  %v854_v35 = vmul.f32 %v848_v63, %v433_v25 }
 0x12a   : > { %v567_v38 = vmul.f32 %v2035_v36, %v2147_v26  ;;  %v507_v51 = vmul.f32 %v2166_v21, %v433_v25  ;;  %v508_v57 = vmul.f32 %v2150_v27, %v2147_v26  ;;  %v855_v7 = vmul.f32 %v848_v63, %v2147_v26 }
 0x12b   : > { %v2156_v41 = vadd.f32 %v479_v30, %v473_v31  ;;  %v2158_v43 = vadd.f32 %v479_v30, %v474_v32  ;;  %579 = vrot.lane.b32.xlu0 %v566_v4, %s1808_s20  ;;  %866 = vrot.lane.b32.xlu2 %v854_v35, %s1809_s8  ;;  %v738_v19 = vmul.f32 %v2191_v16, %v433_v25  ;;  %v2207_v20 = vunpack.i.h.bf16 %v2067_v49 }
 0x12c   : > { %581 = vrot.lane.b32.xlu1 %v567_v38, %s1808_s20  ;;  %v521_v11 = vmul.f32 %v2025_v33, %v507_v51  ;;  %v522_v13 = vmul.f32 %v2025_v33, %v508_v57  ;;  %v615_v33 = vmul.f32 %v2179_v37, %v2147_v26  ;;  %v796_v32 = vmul.f32 %v2210_v23, %v433_v25 }
 0x12d   : > { %v2221_v30 = vsel %vm668_vm14, %v1593_v54, %v2207_v20  ;;  %v675_v4 = vmul.f32 %v2207_v20, %v2147_v26  ;;  %v2237_v54 = vsel %vm711_vm15, %v2191_v16, %v1601_v62 }
 0x12e   : > { %v435_v36 = vpop.f32.mrf.mxu0  ;;  %v458_v55 = vpop.f32.mrf.mxu1  ;;  %v629_v24 = vmul.f32 %v2057_v45, %v615_v33  ;;  %v674_v31 = vmul.f32 %v2221_v30, %v433_v25  ;;  %v810_v49 = vmul.f32 %v2119_v10, %v796_v32 }
 0x12f   : > { %v2173_v61 = vadd.f32 %v435_v36, %v2019_v28  ;;  %v2176_v0 = vadd.f32 %v458_v55, %v2019_v28  ;;  %v2199_v28 = vsel %vm608_vm13, %v1586_v46, %v2179_v37  ;;  %v752_v46 = vmul.f32 %v2076_v53, %v738_v19 }
 0x130   : > { %v614_v63 = vmul.f32 %v2199_v28, %v433_v25  ;;  %v688_v35 = vmul.f32 %v2069_v50, %v674_v31  ;;  %v689_v38 = vmul.f32 %v2069_v50, %v675_v4  ;;  %v739_v36 = vmul.f32 %v2237_v54, %v2147_v26 }
 0x131   : > { %v2182_v39 = vmul.f32 %v471_v47, %v2173_v61  ;;  %v2185_v2 = vmul.f32 %v471_v47, %v2176_v0  ;;  %v2243_v47 = vpop.permute.xlu2 %577  ;;  %v2254_v50 = vsel %vm651_vm0, %v2210_v23, %v1608_v8  ;;  %v570_v55 = vmul.f32 %v2044_v3, %v2176_v0 }
 0x132   : > { %v628_v44 = vmul.f32 %v2057_v45, %v614_v63  ;;  %v2229_v45 = vunpack.i.l.bf16 %v2123_v12  ;;  %v753_v62 = vmul.f32 %v2076_v53, %v739_v36  ;;  %v511_v53 = vmul.f32 %v2150_v27, %v2176_v0 }
 0x133   : > { %868 = vrot.lane.b32.xlu0 %v855_v7, %s1809_s8  ;;  %534 = vrot.lane.b32.xlu2 %v521_v11, %s1805_s14  ;;  %v857_v57 = vmul.f32 %v2129_v14, %v2173_v61  ;;  %v741_v63 = vmul.f32 %v2191_v16, %v2173_v61  ;;  %v618_v12 = vmul.f32 %v2179_v37, %v2176_v0 }
 0x134   : > { %536 = vrot.lane.b32.xlu1 %v522_v13, %s1805_s14  ;;  %v899_v51 = vmul.f32 %v2229_v45, %v433_v25  ;;  %v797_v25 = vmul.f32 %v2254_v50, %v2147_v26  ;;  %v2276_v11 = vsel %vm544_vm1, %v2229_v45, %v1617_v15  ;;  %v525_v13 = vmul.f32 %v2029_v34, %v511_v53 }
 0x135   : > { %v755_v33 = vmul.f32 %v2109_v6, %v741_v63 }
 0x136   : > { %v913_v59 = vmul.f32 %v2138_v18, %v899_v51  ;;  %v811_v7 = vmul.f32 %v2119_v10, %v797_v25  ;;  %v900_v10 = vmul.f32 %v2276_v11, %v2147_v26  ;;  %v799_v26 = vmul.f32 %v2210_v23, %v2173_v61 }
 0x137   : > { %v858_v51 = vmul.f32 %v2129_v14, %v2176_v0  ;;  %v617_v25 = vmul.f32 %v2199_v28, %v2173_v61 }
 0x138   : > { %v813_v32 = vmul.f32 %v2088_v58, %v799_v26 }
 0x139   : > { %v2267_v8 = vpop.permute.xlu2 %583 }
 0x13b   : > { %641 = vrot.lane.b32.xlu0 %v628_v44, %s1800_s13  ;;  %764 = vrot.lane.b32.xlu2 %v752_v46, %s1802_s7  ;;  %v914_v44 = vmul.f32 %v2138_v18, %v900_v10  ;;  %v632_v46 = vmul.f32 %v2074_v52, %v618_v12  ;;  %v569_v18 = vmul.f32 %v2044_v3, %v2173_v61 }
 0x13c   : > { %643 = vrot.lane.b32.xlu1 %v629_v24, %s1800_s13  ;;  %v678_v24 = vmul.f32 %v2207_v20, %v2176_v0  ;;  %v918_v3 = vmul.f32 %v2143_v22, %v2135_v17  ;;  %v742_v10 = vmul.f32 %v2237_v54, %v2176_v0 }
 0x13e   : > { %v692_v4 = vmul.f32 %v2093_v60, %v678_v24  ;;  %v756_v12 = vmul.f32 %v2109_v6, %v742_v10  ;;  %v2360_v24 = vpop.permute.xlu0 %482  ;;  %v903_v6 = vmul.f32 %v2276_v11, %v2176_v0 }
 0x141   : > { %v2290_v15 = vpop.permute.xlu2 %538 }
 0x143   : > { %701 = vrot.lane.b32.xlu0 %v688_v35, %s1798_s29  ;;  %822 = vrot.lane.b32.xlu2 %v810_v49, %s1799_s12  ;;  %v902_v49 = vmul.f32 %v2229_v45, %v2173_v61 }
 0x144   : > { %703 = vrot.lane.b32.xlu1 %v689_v38, %s1798_s29 }
 0x145   : > { %v916_v38 = vmul.f32 %v2143_v22, %v902_v49 }
 0x149   : > { %v2302_v31 = vpop.permute.xlu2 %639 }
 0x14b   : > { %925 = vrot.lane.b32.xlu2 %v913_v59, %s1796_s26  ;;  %766 = vrot.lane.b32.xlu0 %v753_v62, %s1802_s7  ;;  %v510_v62 = vmul.f32 %v2166_v21, %v2173_v61 }
 0x14c   : > { %587 = vrot.lane.b32.xlu1 %v570_v55, %s1808_s20 }
 0x14d   : > { %v524_v55 = vmul.f32 %v2029_v34, %v510_v62  ;;  %v677_v34 = vmul.f32 %v2221_v30, %v2173_v61  ;;  %v800_v61 = vmul.f32 %v2254_v50, %v2176_v0 }
 0x14f   : > { %v691_v63 = vmul.f32 %v2093_v60, %v677_v34 }
 0x151   : > { %v2320_v36 = vpop.permute.xlu2 %645 }
 0x153   : > { %872 = vrot.lane.b32.xlu2 %v857_v57, %s1809_s8  ;;  %824 = vrot.lane.b32.xlu0 %v811_v7, %s1799_s12  ;;  %v631_v57 = vmul.f32 %v2074_v52, %v617_v25 }
 0x154   : > { %542 = vrot.lane.b32.xlu1 %v525_v13, %s1805_s14 }
 0x159   : > { %v2288_v19 = vpop.permute.xlu1 %870  ;;  %v700_v14 = vpop.permute.xlu2 %699 }
 0x15b   : > { %770 = vrot.lane.b32.xlu2 %v755_v33, %s1802_s7  ;;  %927 = vrot.lane.b32.xlu0 %v914_v44, %s1796_s26 }
 0x15c   : > { %649 = vrot.lane.b32.xlu1 %v632_v46, %s1800_s13  ;;  %v814_v46 = vmul.f32 %v2088_v58, %v800_v61 }
 0x161   : > { %v2308_v35 = vpop.permute.xlu1 %768  ;;  %v2339_v7 = vpop.permute.xlu2 %705 }
 0x163   : > { %828 = vrot.lane.b32.xlu2 %v813_v32, %s1799_s12  ;;  %585 = vrot.lane.b32.xlu0 %v569_v18, %s1808_s20  ;;  %v917_v32 = vmul.f32 %v2143_v22, %v903_v6 }
 0x164   : > { %709 = vrot.lane.b32.xlu1 %v692_v4, %s1798_s29 }
 0x169   : > { %v2325_v59 = vpop.permute.xlu1 %774 }
 0x16b   : > { %931 = vrot.lane.b32.xlu2 %v916_v38, %s1796_s26  ;;  %874 = vrot.lane.b32.xlu0 %v858_v51, %s1809_s8 }
 0x16c   : > { %935 = vrot.lane.b32.xlu1 %v918_v3, %s1796_s26 }
 0x171   : > { %v827_v53 = vpop.permute.xlu1 %826 }
 0x173   : > { %540 = vrot.lane.b32.xlu0 %v524_v55, %s1805_s14  ;;  %1088 = vrot.lane.b32.xlu2 %v1795_v29, %s1809_s8 }
 0x174   : > { %1070 = vrot.lane.b32.xlu1 %v2116_v9, %s1799_s12 }
 0x179   : > { %v2343_v13 = vpop.permute.xlu1 %832 }
 0x17b   : > { %647 = vrot.lane.b32.xlu0 %v631_v57, %s1800_s13 }
 0x181   : > { %v2350_v52 = vpop.permute.xlu1 %876 }
 0x183   : > { %707 = vrot.lane.b32.xlu0 %v691_v63, %s1798_s29 }
 0x185   : > { %v867_v9 = vpop.permute.xlu2 %866 }
 0x189   : > { %v930_v26 = vpop.permute.xlu1 %929 }
 0x18b   : > { %772 = vrot.lane.b32.xlu0 %v756_v12, %s1802_s7 }
 0x18d   : > { %v535_v33 = vpop.permute.xlu2 %534 }
 0x18e   : > { %v545_v44 = vsel %vm544_vm1, %v2265_v5, %v535_v33 }
 0x18f   : > { %v553_v60 = vadd.f32 %v545_v44, %v2156_v41 }
 0x193   : > { %830 = vrot.lane.b32.xlu0 %v814_v46, %s1799_s12 }
 0x19b   : > { %933 = vrot.lane.b32.xlu0 %v917_v32, %s1796_s26 }
 0x19d   : > { %v580_v18 = vpop.permute.xlu0 %579 }
 0x19e   : > { %v590_v5 = vsel %vm589_vm2, %v2243_v47, %v580_v18  ;;  %v582_v41 = vpop.permute.xlu1 %581 }
 0x19f   : > { %v598_v4 = vadd.f32 %v590_v5, %v553_v60  ;;  %v591_v22 = vsel %vm589_vm2, %v580_v18, %v582_v41 }
 0x1a3   : > { %1109 = vrot.lane.b32.xlu0 %v2135_v17, %s1796_s26 }
 0x1a5   : > { %v869_v58 = vpop.permute.xlu0 %868 }
 0x1a6   : > { %v537_v49 = vpop.permute.xlu1 %536  ;;  %v879_v41 = vsel %vm878_vm3, %v867_v9, %v869_v58 }
 0x1a7   : > { %v546_v38 = vsel %vm544_vm1, %v535_v33, %v537_v49  ;;  %v765_v33 = vpop.permute.xlu2 %764 }
 0x1a8   : > { %v554_v0 = vadd.f32 %v546_v38, %v2158_v43 }
 0x1aa   : > { %v599_v51 = vadd.f32 %v591_v22, %v554_v0 }
 0x1ab   : > { %1049 = vrot.lane.b32.xlu0 %v2102_v1, %s1802_s7 }
 0x1ad   : > { %v642_v3 = vpop.permute.xlu0 %641 }
 0x1ae   : > { %v652_v47 = vsel %vm651_vm0, %v2302_v31, %v642_v3  ;;  %v644_v62 = vpop.permute.xlu1 %643 }
 0x1af   : > { %v660_v55 = vadd.f32 %v652_v47, %v598_v4  ;;  %v653_v17 = vsel %vm651_vm0, %v642_v3, %v644_v62  ;;  %v823_v46 = vpop.permute.xlu2 %822  ;;  %v880_v4 = vsel %vm878_vm3, %v869_v58, %v2288_v19  ;;  %v487_v19 = vadd.f32 %v2360_v24, %v2182_v39 }
 0x1b0   : > { %v661_v25 = vadd.f32 %v653_v17, %v599_v51 }
 0x1b5   : > { %v702_v57 = vpop.permute.xlu0 %701 }
 0x1b6   : > { %v712_v34 = vsel %vm711_vm15, %v700_v14, %v702_v57  ;;  %v704_v63 = vpop.permute.xlu1 %703 }
 0x1b7   : > { %v720_v43 = vadd.f32 %v712_v34, %v660_v55  ;;  %v713_v10 = vsel %vm711_vm15, %v702_v57, %v704_v63  ;;  %v926_v0 = vpop.permute.xlu2 %925 }
 0x1b8   : > { %v721_v12 = vadd.f32 %v713_v10, %v661_v25 }
 0x1bd   : > { %v767_v61 = vpop.permute.xlu0 %766 }
 0x1be   : > { %v776_v1 = vsel %vm668_vm14, %v765_v33, %v767_v61  ;;  %v777_v31 = vsel %vm668_vm14, %v767_v61, %v2308_v35 }
 0x1bf   : > { %v784_v44 = vadd.f32 %v776_v1, %v720_v43  ;;  %v785_v60 = vadd.f32 %v777_v31, %v721_v12  ;;  %v873_v57 = vpop.permute.xlu2 %872  ;;  %v488_v31 = vadd.f32 %v2360_v24, %v2185_v2 }
 0x1c5   : > { %v825_v6 = vpop.permute.xlu0 %824 }
 0x1c6   : > { %v834_v32 = vsel %vm608_vm13, %v823_v46, %v825_v6  ;;  %v835_v14 = vsel %vm608_vm13, %v825_v6, %v827_v53  ;;  %v588_v53 = vpop.permute.xlu1 %587 }
 0x1c7   : > { %v842_v18 = vadd.f32 %v834_v32, %v784_v44  ;;  %v843_v5 = vadd.f32 %v835_v14, %v785_v60  ;;  %v771_v1 = vpop.permute.xlu2 %770 }
 0x1c9   : > { %v887_v49 = vadd.f32 %v879_v41, %v842_v18  ;;  %v888_v38 = vadd.f32 %v880_v4, %v843_v5 }
 0x1cd   : > { %v928_v35 = vpop.permute.xlu0 %927 }
 0x1ce   : > { %v937_v22 = vsel %vm501_vm12, %v926_v0, %v928_v35  ;;  %v938_v51 = vsel %vm501_vm12, %v928_v35, %v930_v26  ;;  %v543_v58 = vpop.permute.xlu1 %542 }
 0x1cf   : > { %v945_v3 = vadd.f32 %v937_v22, %v887_v49  ;;  %v946_v47 = vadd.f32 %v938_v51, %v888_v38  ;;  %v829_v32 = vpop.permute.xlu2 %828 }
 0x1d5   : > { %v586_v62 = vpop.permute.xlu0 %585 }
 0x1d6   : > { %v592_v63 = vsel %vm589_vm2, %v2267_v8, %v586_v62  ;;  %v593_v8 = vsel %vm589_vm2, %v586_v62, %v588_v53 }
 0x1d7   : > { %v932_v22 = vpop.permute.xlu2 %931 }
 0x1dd   : > { %v875_v55 = vpop.permute.xlu0 %874 }
 0x1de   : > { %v881_v51 = vsel %vm878_vm3, %v873_v57, %v875_v55  ;;  %v882_v62 = vsel %vm878_vm3, %v875_v55, %v2350_v52 }
 0x1e5   : > { %v541_v17 = vpop.permute.xlu0 %540 }
 0x1e6   : > { %v547_v9 = vsel %vm544_vm1, %v2290_v15, %v541_v17  ;;  %v650_v15 = vpop.permute.xlu1 %649  ;;  %v548_v39 = vsel %vm544_vm1, %v541_v17, %v543_v58 }
 0x1e7   : > { %v555_v34 = vadd.f32 %v547_v9, %v487_v19  ;;  %v556_v44 = vadd.f32 %v548_v39, %v488_v31 }
 0x1e9   : > { %v600_v43 = vadd.f32 %v592_v63, %v555_v34  ;;  %v601_v6 = vadd.f32 %v593_v8, %v556_v44  ;;  %v1810_v44 = vmov 6   ;;  %v2472_v8 = vld [vmem:[%s2574_s1] sm:$0xff] }
 0x1ea   : > { %1666 = vset.pattern.permute.xlu0 %v1810_v44 }
 0x1ed   : > { %v648_v25 = vpop.permute.xlu0 %647 }
 0x1ee   : > { %v654_v26 = vsel %vm651_vm0, %v2320_v36, %v648_v25  ;;  %v655_v36 = vsel %vm651_vm0, %v648_v25, %v650_v15  ;;  %v710_v46 = vpop.permute.xlu1 %709 }
 0x1ef   : > { %v662_v10 = vadd.f32 %v654_v26, %v600_v43 }
 0x1f5   : > { %v708_v12 = vpop.permute.xlu0 %707 }
 0x1f6   : > { %v714_v33 = vsel %vm711_vm15, %v2339_v7, %v708_v12  ;;  %v715_v14 = vsel %vm711_vm15, %v708_v12, %v710_v46  ;;  %v663_v7 = vadd.f32 %v655_v36, %v601_v6  ;;  %v936_v53 = vpop.permute.xlu1 %935  ;;  %v1812_v46 = vmov 2  }
 0x1f7   : > { %v722_v61 = vadd.f32 %v714_v33, %v662_v10  ;;  %1668 = vset.pattern.permute.xlu2 %v1812_v46 }
 0x1f8   : > { %v723_v41 = vadd.f32 %v715_v14, %v663_v7 }
 0x1fd   : > { %v773_v60 = vpop.permute.xlu0 %772 }
 0x1fe   : > { %v778_v18 = vsel %vm668_vm14, %v771_v1, %v773_v60  ;;  %v779_v5 = vsel %vm668_vm14, %v773_v60, %v2325_v59  ;;  %v1071_v39 = vpop.permute.xlu1 %1070 }
 0x1ff   : > { %v786_v49 = vadd.f32 %v778_v18, %v722_v61  ;;  %v787_v38 = vadd.f32 %v779_v5, %v723_v41 }
 0x205   : > { %v831_v4 = vpop.permute.xlu0 %830 }
 0x206   : > { %v836_v2 = vsel %vm608_vm13, %v829_v32, %v831_v4  ;;  %v837_v24 = vsel %vm608_vm13, %v831_v4, %v2343_v13 }
 0x207   : > { %v844_v0 = vadd.f32 %v836_v2, %v786_v49  ;;  %v845_v35 = vadd.f32 %v837_v24, %v787_v38 }
 0x209   : > { %v889_v17 = vadd.f32 %v881_v51, %v844_v0  ;;  %v890_v59 = vadd.f32 %v882_v62, %v845_v35  ;;  %v1813_v35 = vmov 3  }
 0x20d   : > { %v934_v9 = vpop.permute.xlu0 %933 }
 0x20e   : > { %v939_v19 = vsel %vm501_vm12, %v932_v22, %v934_v9  ;;  %v940_v58 = vsel %vm501_vm12, %v934_v9, %v936_v53 }
 0x20f   : > { %v947_v25 = vadd.f32 %v939_v19, %v889_v17  ;;  %v948_v13 = vadd.f32 %v940_v58, %v890_v59 }
 0x211   : > { %v2417_v34 = vmul.f32 %v947_v25, %v945_v3  ;;  %v2419_v63 = vmul.f32 %v948_v13, %v946_v47 }
 0x213   : > { %v1631_v57 = vpack.i.bf16 %v2417_v34, %v1795_v29  ;;  %v1626_v52 = vpack.i.bf16 %v2419_v63, %v2417_v34  ;;  %v1060_v55 = vmul.f32 %v2210_v23, %v2417_v34  ;;  %v1061_v26 = vmul.f32 %v2419_v63, %v2254_v50 }
 0x214   : > { %v1099_v47 = vmul.f32 %v2229_v45, %v2417_v34  ;;  %v1100_v29 = vmul.f32 %v2419_v63, %v2276_v11  ;;  %v1017_v43 = vmul.f32 %v2417_v34, %v2221_v30  ;;  %v996_v23 = vmul.f32 %v2417_v34, %v2199_v28 }
 0x215   : > { %1632 = vrot.lane.b32.xlu2 %v1631_v57, %s1808_s20  ;;  %1627 = vrot.lane.b32.xlu1 %v1626_v52, %s1809_s8  ;;  %v1641_v3 = vpack.i.bf16 %v1061_v26, %v1060_v55  ;;  %v1039_v45 = vmul.f32 %v2191_v16, %v2417_v34  ;;  %v1040_v30 = vmul.f32 %v2419_v63, %v2237_v54  ;;  %v1089_v54 = vpop.permute.xlu2 %1088  ;;  %v1110_v15 = vpop.permute.xlu0 %1109  ;;  %s1496_s8 = sshll.u32 %s1873_s25, 4  ;;  %s1379_s25 = scalar_lea.sflag [#allocation6], %s1938_s11 }
 0x216   : > { %v1636_v50 = vpack.i.bf16 %v1100_v29, %v1099_v47  ;;  %v1651_v10 = vpack.i.bf16 %v1017_v43, %v2083_v56  ;;  %v1656_v12 = vpack.i.bf16 %v996_v23, %v2064_v48  ;;  %v997_v28 = vmul.f32 %v2179_v37, %v2419_v63  ;;  %v313_v23 = vld [vmem:[%s2576_s3] sm:$0xff] }
 0x217   : > { %1642 = vrot.lane.b32.xlu0 %v1641_v3, %s1799_s12  ;;  %v1646_v11 = vpack.i.bf16 %v1040_v30, %v1039_v45  ;;  %v957_v48 = vmul.f32 %v2417_v34, %v2166_v21  ;;  %v1018_v56 = vmul.f32 %v2207_v20, %v2419_v63  ;;  %v958_v37 = vmul.f32 %v2150_v27, %v2419_v63  ;;  %s1390_s12 = scalar_lea.hbm %s2579_s6, %s1496_s8 }
 0x218   : > { %v1811_v27 = vmov 9  }
 0x219   : > { %v1661_v16 = vpack.i.bf16 %v957_v48, %v2048_v40  ;;  %1667 = vset.pattern.permute.xlu1 %v1811_v27 }
 0x21d   : > { %1637 = vrot.lane.b32.xlu2 %v1636_v50, %s1796_s26  ;;  %1652 = vrot.lane.b32.xlu1 %v1651_v10, %s1798_s29  ;;  %v1050_v31 = vpop.permute.xlu0 %1049 }
 0x21f   : > { %1657 = vrot.lane.b32.xlu0 %v1656_v12, %s1800_s13 }
 0x225   : > { %1647 = vrot.lane.b32.xlu2 %v1646_v11, %s1802_s7  ;;  %1005 = vrot.lane.b32.xlu1 %v997_v28, %s1800_s13  ;;  %s269_s13 = scalar_lea.vmem [#allocation7], %s1472_s16  ;;  %s1394_s7 = sshll.u32 %s1390_s12, 4  ;;  %s1395_s7 = int_to_ptr.hbm [resolvable:$true] %s1394_s7 }
 0x227   : > { %984 = vrot.lane.b32.xlu0 %v2419_v63, %s1808_s20 }
 0x22d   : > { %1026 = vrot.lane.b32.xlu2 %v1018_v56, %s1798_s29  ;;  %1662 = vrot.lane.b32.xlu1 %v1661_v16, %s1805_s14 }
 0x22f   : > { %1136 = vperm.xlu0 %1666, %v2472_v8  }
 0x235   : > { %966 = vrot.lane.b32.xlu2 %v958_v37, %s1805_s14  ;;  %1184 = vperm.xlu1 %1667, %v2472_v8   ;;  %v1686_v37 = vld [vmem:[%s1944_s28] sm:$0xff]  ;;  %s1733_s14 = sshra.s32 %s1395_s7, 4  ;;  %s1734_s14 = int_to_ptr.hbm [resolvable:$true] %s1733_s14 }
 0x236   : > { %s1735_s15 = scalar_lea.hbm %s1734_s14, 16  ;;  %p1740_p0 = scmp.lt.s32.totalorder %s1734_s14, %s2579_s6 }
 0x237   : > { %p1736_p6 = scmp.ne.s32.totalorder %s1734_s14, %s1735_s15  ;;  %p1741_p1 = scmp.lt.s32.totalorder %s1739_s17, %s1735_s15 }
 0x239   : > { %p1737_p9 = pnand %p1736_p6, %p1902_p11  ;;  %p1742_p3 = por %p1741_p1, %p1740_p0 }
 0x23b   : > { %p1738_p13 = pneg %p1737_p9 }
 0x23d   : > { %1248 = vperm.xlu2 %1668, %v2472_v8   ;;  %1669 = vset.pattern.permute.xlu1 %v1813_v35  ;;  %p1743_p4 = pnand %p1742_p3, %p1738_p13 }
 0x23e   : > { %1254 = vperm.xlu1 %1669, %v2472_v8  }
 0x26f   : > { %v2465_v33 = vpop.permute.xlu2 %1632 }
 0x270   : > { %v1635_v53 = vunpack.i.h.bf16 %v2465_v33  ;;  %v1634_v17 = vunpack.i.l.bf16 %v2465_v33  ;;  %v1687_v33 = vld [vmem:[%s1944_s28 + $0x8] sm:$0xff]  ;;  %s1392_s28 = sshll.u32 %s269_s13, 4  ;;  %s1393_s28 = int_to_ptr.vmem [resolvable:$true] %s1392_s28 }
 0x272   : > { %v986_v52 = vsel %vm589_vm2, %v1634_v17, %v1635_v53 }
 0x277   : > { %v1638_v61 = vpop.permute.xlu2 %1637 }
 0x278   : > { %v1640_v21 = vunpack.i.h.bf16 %v1638_v61  ;;  %v1639_v1 = vunpack.i.l.bf16 %v1638_v61 }
 0x27a   : > { %v1111_v20 = vsel %vm501_vm12, %v1639_v1, %v1640_v21  ;;  %v1112_v40 = vsel %vm501_vm12, %v1640_v21, %v1110_v15 }
 0x27b   : > { %1150 = vmatpush.msra.mxu2 %v1111_v20  ;;  %1170 = vmatpush.msra.mxu3 %v1112_v40 }
 0x27f   : > { %v1648_v60 = vpop.permute.xlu2 %1647 }
 0x280   : > { %v1650_v14 = vunpack.i.h.bf16 %v1648_v60  ;;  %v1649_v7 = vunpack.i.l.bf16 %v1648_v60 }
 0x282   : > { %v1051_v38 = vsel %vm668_vm14, %v1649_v7, %v1650_v14  ;;  %v1052_v0 = vsel %vm668_vm14, %v1650_v14, %v1050_v31 }
 0x287   : > { %v1628_v36 = vpop.permute.xlu1 %1627  ;;  %v1027_v59 = vpop.permute.xlu2 %1026 }
 0x288   : > { %v1630_v6 = vunpack.i.h.bf16 %v1628_v36  ;;  %v1629_v32 = vunpack.i.l.bf16 %v1628_v36 }
 0x289   : > { %v1643_v18 = vpop.permute.xlu0 %1642 }
 0x28a   : > { %v1645_v5 = vunpack.i.h.bf16 %v1643_v18  ;;  %v1644_v41 = vunpack.i.l.bf16 %v1643_v18  ;;  %v1090_v4 = vsel %vm878_vm3, %v1629_v32, %v1630_v6  ;;  %v1091_v2 = vsel %vm878_vm3, %v1630_v6, %v1089_v54 }
 0x28b   : > { %1151 = vmatpush.msra.mxu2 %v1090_v4  ;;  %1171 = vmatpush.msra.mxu3 %v1091_v2 }
 0x28c   : > { %v1072_v24 = vsel %vm608_vm13, %v1644_v41, %v1645_v5  ;;  %v1073_v49 = vsel %vm608_vm13, %v1645_v5, %v1071_v39 }
 0x28d   : > { %1152 = vmatpush.msra.mxu2 %v1072_v24  ;;  %1172 = vmatpush.msra.mxu3 %v1073_v49 }
 0x28f   : > { %v1653_v22 = vpop.permute.xlu1 %1652  ;;  %1153 = vmatpush.msra.mxu2 %v1051_v38  ;;  %1173 = vmatpush.msra.mxu3 %v1052_v0  ;;  %v967_v43 = vpop.permute.xlu2 %966 }
 0x290   : > { %v1655_v51 = vunpack.i.h.bf16 %v1653_v22  ;;  %v1654_v62 = vunpack.i.l.bf16 %v1653_v22 }
 0x291   : > { %v1658_v9 = vpop.permute.xlu0 %1657  ;;  %1154 = vmatpush.msra.mxu2 %v2417_v34  ;;  %1174 = vmatpush.msra.mxu3 %v2419_v63 }
 0x292   : > { %v1660_v19 = vunpack.i.h.bf16 %v1658_v9  ;;  %v1659_v58 = vunpack.i.l.bf16 %v1658_v9  ;;  %v1028_v25 = vsel %vm711_vm15, %v1654_v62, %v1655_v51  ;;  %v1029_v13 = vsel %vm711_vm15, %v1655_v51, %v1027_v59 }
 0x293   : > { %1155 = vmatpush.msra.mxu2 %v1028_v25  ;;  %1175 = vmatpush.msra.mxu3 %v1029_v13  ;;  %v1688_v25 = vld [vmem:[%s2574_s1 + $0x8] sm:$0xff] }
 0x294   : > { %v1007_v57 = vsel %vm651_vm0, %v1659_v58, %v1660_v19  ;;  %v1814_v58 = vmov 7  }
 0x295   : > { %1156 = vmatpush.msra.mxu2 %v1007_v57  ;;  %1671 = vset.pattern.permute.xlu0 %v1814_v58 }
 0x296   : > { %1670 = vset.pattern.permute.xlu2 %v1814_v58  ;;  %1264 = vperm.xlu0 %1671, %v1688_v25  }
 0x297   : > { %v1006_v55 = vpop.permute.xlu1 %1005  ;;  %1157 = vmatpush.msra.mxu2 %v986_v52  ;;  %1260 = vperm.xlu2 %1670, %v2472_v8  }
 0x298   : > { %v1008_v26 = vsel %vm651_vm0, %v1660_v19, %v1006_v55 }
 0x299   : > { %v985_v34 = vpop.permute.xlu0 %984  ;;  %1176 = vmatpush.msra.mxu3 %v1008_v26 }
 0x29a   : > { %v987_v63 = vsel %vm589_vm2, %v1635_v53, %v985_v34 }
 0x29b   : > { %1177 = vmatpush.msra.mxu3 %v987_v63 }
 0x29f   : > { %v1663_v3 = vpop.permute.xlu1 %1662 }
 0x2a0   : > { %v1665_v47 = vunpack.i.h.bf16 %v1663_v3  ;;  %v1664_v29 = vunpack.i.l.bf16 %v1663_v3 }
 0x2a1   : > { %v1137_v12 = vpop.permute.xlu0 %1136 }
 0x2a2   : > { %v968_v50 = vsel %vm544_vm1, %v1664_v29, %v1665_v47  ;;  %v969_v10 = vsel %vm544_vm1, %v1665_v47, %v967_v43 }
 0x2a3   : > { %1158 = vmatpush.msra.mxu2 %v968_v50  ;;  %1178 = vmatpush.msra.mxu3 %v969_v10 }
 0x2a4   : > { %1482 = vmatmul.msk.f32.vlgmr.msra.gmra.mxu2 %vm1139_vm4, %v313_v23  ;;  %1483 = vmatmul.msk.f32.vlgmr.msra.gmra.mxu3 %vm1139_vm4, %v313_v23  ;;  %v1249_v23 = vpop.permute.xlu2 %1248 }
 0x2a7   : > { %v1185_v45 = vpop.permute.xlu1 %1184 }
 0x327   : > { %v1160_v30 = vpop.f32.mrf.mxu2  ;;  %v1180_v11 = vpop.f32.mrf.mxu3 }
 0x328   : > { %v1161_v28 = vadd.f32 %v1160_v30, %v1137_v12  ;;  %v1181_v48 = vadd.f32 %v1180_v11, %v1137_v12  ;;  %v1255_v30 = vpop.permute.xlu1 %1254 }
 0x32a   : > { %v1187_v56 = vmul.f32 %v1185_v45, %v1161_v28  ;;  %v1188_v16 = vmul.f32 %v1185_v45, %v1181_v48 }
 0x32c   : > { %v2500_v54 = vadd.f32 %v1686_v37, %v1187_v56  ;;  %v2503_v15 = vadd.f32 %v1687_v33, %v1188_v16  ;;  %v314_v56 = vld [vmem:[%s2577_s4] sm:$0xff]  ;;  %v315_v37 = vld [vmem:[%s2577_s4 + $0x8] sm:$0xff]  ;;  %v1815_v33 = vmov 8  }
 0x32d   : > { %1672 = vset.pattern.permute.xlu1 %v1815_v33 }
 0x32e   : > { %v1191_v61 = vrot.slane %v2500_v54, 4  ;;  %v1197_v21 = vrot.slane %v2503_v15, 4  ;;  %1322 = vperm.xlu1 %1672, %v2472_v8  }
 0x330   : > { %v1192_v1 = vadd.f32 %v1191_v61, %v2500_v54  ;;  %v1198_v20 = vadd.f32 %v1197_v21, %v2503_v15  ;;  %v1816_v61 = vmov 10  }
 0x331   : > { %1673 = vset.pattern.permute.xlu2 %v1816_v61  ;;  %1674 = vset.pattern.permute.xlu0 %v1816_v61 }
 0x332   : > { %v1193_v40 = vrot.slane %v1192_v1, 2  ;;  %v1199_v39 = vrot.slane %v1198_v20, 2  ;;  %1369 = vperm.xlu2 %1673, %v2472_v8  }
 0x334   : > { %v1194_v31 = vadd.f32 %v1193_v40, %v1192_v1  ;;  %v1200_v44 = vadd.f32 %v1199_v39, %v1198_v20  ;;  %v1261_v20 = vpop.permute.xlu2 %1260  ;;  %v1265_v40 = vpop.permute.xlu0 %1264 }
 0x336   : > { %v1195_v27 = vrot.slane %v1194_v31, 1  ;;  %v1201_v60 = vrot.slane %v1200_v44, 1 }
 0x338   : > { %v1196_v36 = vadd.f32 %v1195_v27, %v1194_v31  ;;  %v1202_v46 = vadd.f32 %v1201_v60, %v1200_v44 }
 0x33a   : > { %v1203_v6 = vmul.f32 %v1196_v36, %v1981_v42  ;;  %v1204_v32 = vmul.f32 %v1202_v46, %v1981_v42 }
 0x33c   : > { %v1205_v14 = vsub.f32 %v2500_v54, %v1203_v6  ;;  %v1206_v7 = vsub.f32 %v2503_v15, %v1204_v32  ;;  %v316_v6 = vld [vmem:[%s2578_s5] sm:$0xff] }
 0x33e   : > { %v1207_v18 = vmul.f32 %v1205_v14, %v1205_v14  ;;  %v1208_v5 = vmul.f32 %v1206_v7, %v1206_v7 }
 0x340   : > { %v1209_v41 = vrot.slane %v1207_v18, 4  ;;  %v1215_v4 = vrot.slane %v1208_v5, 4 }
 0x342   : > { %v1210_v2 = vadd.f32 %v1209_v41, %v1207_v18  ;;  %v1216_v24 = vadd.f32 %v1215_v4, %v1208_v5 }
 0x344   : > { %v1211_v49 = vrot.slane %v1210_v2, 2  ;;  %v1217_v38 = vrot.slane %v1216_v24, 2 }
 0x346   : > { %v1212_v0 = vadd.f32 %v1211_v49, %v1210_v2  ;;  %v1218_v35 = vadd.f32 %v1217_v38, %v1216_v24 }
 0x348   : > { %v1213_v22 = vrot.slane %v1212_v0, 1  ;;  %v1219_v51 = vrot.slane %v1218_v35, 1 }
 0x34a   : > { %v1214_v62 = vadd.f32 %v1213_v22, %v1212_v0  ;;  %v1220_v53 = vadd.f32 %v1219_v51, %v1218_v35 }
 0x34c   : > { %v1221_v17 = vmul.f32 %v1214_v62, %v1981_v42  ;;  %v1222_v59 = vmul.f32 %v1220_v53, %v1981_v42 }
 0x34e   : > { %v1223_v9 = vadd.f32 1e-06, %v1221_v17  ;;  %v1224_v19 = vadd.f32 1e-06, %v1222_v59 }
 0x350   : > { %1681 = vrsqrt.f32 %v1223_v9  ;;  %vm1231_vm7 = vweird.f32 %v1223_v9  ;;  %vm1241_vm9 = vweird.f32 %v1224_v19 }
 0x351   : > { %1683 = vrsqrt.f32 %v1224_v19 }
 0x356   : > { %v1682_v13 = vpop.eup %1681 }
 0x357   : > { %v1684_v57 = vpop.eup %1683  ;;  %v1226_v52 = vmul.f32 %v1682_v13, %v1223_v9  ;;  %vm1232_vm5 = vweird.f32 %v1682_v13 }
 0x358   : > { %v1236_v55 = vmul.f32 %v1684_v57, %v1224_v19  ;;  %vm1242_vm6 = vweird.f32 %v1684_v57  ;;  %vm1233_vm8 = vmor %vm1231_vm7, %vm1232_vm5 }
 0x359   : > { %v1227_v26 = vmul.f32 %v1682_v13, %v1226_v52  ;;  %vm1243_vm10 = vmor %vm1241_vm9, %vm1242_vm6 }
 0x35a   : > { %v1237_v42 = vmul.f32 %v1684_v57, %v1236_v55 }
 0x35b   : > { %v1228_v34 = vmul.f32 0.5, %v1227_v26 }
 0x35c   : > { %v1238_v63 = vmul.f32 0.5, %v1237_v42 }
 0x35d   : > { %v1229_v3 = vsub.f32 1.5, %v1228_v34 }
 0x35e   : > { %v1239_v47 = vsub.f32 1.5, %v1238_v63 }
 0x35f   : > { %v1230_v29 = vmul.f32 %v1682_v13, %v1229_v3 }
 0x360   : > { %v1240_v43 = vmul.f32 %v1684_v57, %v1239_v47 }
 0x361   : > { %v1234_v50 = vsel %vm1233_vm8, %v1682_v13, %v1230_v29 }
 0x362   : > { %v1244_v10 = vsel %vm1243_vm10, %v1684_v57, %v1240_v43  ;;  %v1245_v12 = vmul.f32 %v1234_v50, %v1205_v14 }
 0x363   : > { %v1246_v45 = vmul.f32 %v1244_v10, %v1206_v7 }
 0x364   : > { %v1251_v11 = vmul.f32 %v1249_v23, %v1245_v12 }
 0x365   : > { %v1252_v28 = vmul.f32 %v1249_v23, %v1246_v45 }
 0x366   : > { %v1257_v48 = vadd.f32 %v1255_v30, %v1251_v11 }
 0x367   : > { %v1258_v16 = vadd.f32 %v1255_v30, %v1252_v28 }
 0x368   : > { %1288 = vmatpush.msrb.mxu0 %v1257_v48 }
 0x369   : > { %1311 = vmatpush.msrb.mxu1 %v1258_v16  ;;  %1484 = vmatmul.msk.f32.vlgmr.msrb.gmra.mxu0 %vm408_vm11, %v314_v56 }
 0x36a   : > { %1486 = vmatmul.msk.f32.vlgmr.msrb.gmra.mxu1 %vm408_vm11, %v314_v56 }
 0x371   : > { %1485 = vmatmul.msk.f32.gmra.mxu0 %vm408_vm11, %v315_v37 }
 0x372   : > { %1487 = vmatmul.msk.f32.gmra.mxu1 %vm408_vm11, %v315_v37 }
 0x38c   : > { %v1370_v7 = vpop.permute.xlu2 %1369 }
 0x3a0   : > { %v1323_v8 = vpop.permute.xlu1 %1322 }
 0x3e6   : > { %v1290_v21 = vpop.f32.mrf.mxu0 }
 0x3e7   : > { %v1313_v1 = vpop.f32.mrf.mxu1  ;;  %v1291_v31 = vadd.f32 %v1290_v21, %v1261_v20 }
 0x3e8   : > { %v1314_v60 = vadd.f32 %v1313_v1, %v1261_v20 }
 0x3ee   : > { %v1293_v39 = vpop.f32.mrf.mxu0 }
 0x3ef   : > { %v1294_v44 = vadd.f32 %v1293_v39, %v1265_v40  ;;  %v1316_v27 = vpop.f32.mrf.mxu1 }
 0x3f0   : > { %v1317_v36 = vadd.f32 %v1316_v27, %v1265_v40 }
 0x3f1   : > { %v1319_v46 = vmul.f32 %v1294_v44, %v1291_v31 }
 0x3f2   : > { %v1320_v32 = vmul.f32 %v1317_v36, %v1314_v60 }
 0x3f3   : > { %1343 = vmatpush.msrb.mxu2 %v1319_v46 }
 0x3f4   : > { %1363 = vmatpush.msrb.mxu3 %v1320_v32  ;;  %1488 = vmatmul.msk.f32.vlgmr.msrb.gmra.mxu2 %vm408_vm11, %v316_v6 }
 0x3f5   : > { %1489 = vmatmul.msk.f32.vlgmr.msrb.gmra.mxu3 %vm408_vm11, %v316_v6 }
 0x477   : > { %v1345_v14 = vpop.f32.mrf.mxu2 }
 0x478   : > { %v1346_v18 = vadd.f32 %v1345_v14, %v1323_v8  ;;  %v1365_v5 = vpop.f32.mrf.mxu3 }
 0x479   : > { %v1366_v41 = vadd.f32 %v1365_v5, %v1323_v8 }
 0x47a   : > { %v1372_v4 = vmul.f32 %v1370_v7, %v1346_v18 }
 0x47b   : > { %v1373_v2 = vmul.f32 %v1370_v7, %v1366_v41 }
 0x47c   : > { %v1374_v24 = vadd.f32 %v1372_v4, %v2500_v54 }
 0x47d   : > { %v1375_v49 = vadd.f32 %v1373_v2, %v2503_v15 }
 0x47e   : > { %1376 = vst [vmem:[%s269_s13] sm:$0xff] %v1374_v24 }
 0x47f   : > { %1377 = vst [vmem:[%s269_s13 + $0x8] sm:$0xff] %v1375_v49 }
 0x480   : > { %1746 = shalt.err (!%p1743_p4)
}
 0x481   : > { %1499 = dma.vmem_to_hbm [thread:$0]  (%p1902_p11), %s1393_s28, 256, %s1395_s7, %s1379_s25  }
 0x482 PF: > { %s1406_s11 = sand.u32 1, %s1773_s21   ;;  %p2585_p7 = scmp.ge.s32.totalorder %s1785_s24, 2 }
 0x483   : > { %s1407_s8 = scalar_lea.sflag [#allocation6], %s1406_s11 }
 0x484   : > { %p1506_p5 = pnand %p2585_p7, %p1906_p12 }
 0x486   : > { %p1507_p8 = pneg %p1506_p5 }
 0x488   : > { %1768 = dma.done.wait (%p1507_p8), %s1407_s8, 256  }
 0x489   : > { %1770 = vsyncadd (%p1507_p8), %s1407_s8, 4294967040  ;;  %p19_p10 = scmp.ge.s32.totalorder %s1877_s27, 4   ;;  %s2586_s21 = smov %s1777_s22 }
 0x48a   : > { %s2587_s22 = smov %s1781_s23  ;;  %s2588_s23 = smov %s1889_s30 }
 0x48b   : > { %s2589_s24 = smov %s1877_s27  ;;  %21 = sbr.rel (!%p19_p10) target bundleno = 5 (0x5), region = 89 }
 0x490   :  { %1413 = vsyncpa [#allocation5], 1 }
 0x491   :  { %1415 = vsyncpa [#allocation5 + $0x1], 1 }
 0x492   :  { %1416 = vsyncpa [#allocation6], 1 }
 0x493   :  { %1418 = vsyncpa [#allocation6 + $0x1], 1 }

</bundles_post_ra>
